<compile_context>
chip_gen: v6e
topology: v6e:2x2x1
jax: 0.10.0
libtpu: 0.0.40
codegen_flags: <defaults>
</compile_context>

<pallas_src>
import functools

import jax
import jax.numpy as jnp
from jax import lax
from jax.experimental import pallas as pl
from jax.experimental.pallas import tpu as pltpu


LANE = 128


def _round_up(x, m):
    return (x + m - 1) // m * m


def _choose_batch_tiling(B, T, target_rows=2048):
    """Rows per grid step ~target_rows; pad B so bblk always divides it.
    Prefer >=2 grid steps so both v7x TensorCores get work."""
    bblk = max(1, min(B, target_rows // max(T, 1)))
    if bblk >= B and B > 1:
        bblk = max(1, (B + 1) // 2)
    B_pad = _round_up(B, bblk)
    return bblk, B_pad


def _tpu_flags():
    """Generation-specific toggles (fused K=3C matmul, bf16 transcendentals)."""
    try:
        kind = jax.devices()[0].device_kind.lower()
    except Exception:
        kind = ""
    is_v5e = ("v5 lite" in kind) or ("v5e" in kind) or ("v5litepod" in kind)
    return {"fuse_taps": not is_v5e, "bf16_act": not is_v5e}


# ----------------------------- Pallas kernel --------------------------------
def _wave_block_kernel(num_rates, fuse_taps, bf16_act, apply_conv0, *refs):
    """One (bblk, T) slab per grid step.

    Refs (in order):
      x_ref    : (bblk, T, C_lane_in) bf16   input tile (x padded, or h if conv0
                                             was hoisted to XLA)
      [w0t_ref : (Cp_in, Cp) bf16, b0_ref : (1, Cp) f32]   only if apply_conv0
      wfg_ref  : (R, 3*Cp, 2*Cp) bf16        fused [3 taps] x [filter | gate]
      bfg_ref  : (R, 1, 2*Cp)  f32
      wrt_ref  : (R, Cp, Cp)   bf16          convs[i+1] 1x1 weights, transposed
      br_ref   : (R, 1, Cp)    f32
      out_ref  : (bblk, T, Cp) bf16
      [hs3_ref : (bblk*T, 3*Cp) bf16 VMEM scratch]         only if fuse_taps
    """
    refs = list(refs)
    x_ref = refs.pop(0)
    if apply_conv0:
        w0t_ref = refs.pop(0)
        b0_ref = refs.pop(0)
    wfg_ref = refs.pop(0)
    bfg_ref = refs.pop(0)
    wrt_ref = refs.pop(0)
    br_ref = refs.pop(0)
    out_ref = refs.pop(0)
    hs3_ref = refs.pop(0) if fuse_taps else None

    bblk, T = x_ref.shape[0], x_ref.shape[1]
    cp = out_ref.shape[2]
    M = bblk * T

    if apply_conv0:
        x = x_ref[...].reshape(M, x_ref.shape[2])                 # bf16 (M, Cp_in)
        h = jnp.dot(x, w0t_ref[...],
                    preferred_element_type=jnp.float32) + b0_ref[...]
    else:
        h = x_ref[...].reshape(M, cp).astype(jnp.float32)         # conv0 done in XLA
    res = h

    # Per-row local time index, column-shaped (M, 1); the where masks broadcast
    # across lanes.  The masks (t - d >= 0 / t + d < T) reproduce the zero
    # padding of the dilated conv and simultaneously kill any rows a roll would
    # leak across batch boundaries inside the packed (bblk*T) axis.
    t_col = lax.broadcasted_iota(jnp.int32, (M, 1), 0) % T
    zero = jnp.zeros((), jnp.float32)

    for i in range(num_rates):                                    # static unroll
        d = 2 ** i
        left = jnp.where(t_col >= d, pltpu.roll(h, shift=d % M, axis=0), zero)
        right = jnp.where(t_col + d < T, pltpu.roll(h, shift=(-d) % M, axis=0), zero)

        if fuse_taps:
            # Assemble the (M, 3*Cp) operand directly in VMEM scratch (no
            # concatenate temporaries), then one fat K=3*Cp MXU matmul
            # covering all 3 taps and both the filter & gate branches.
            hs3_ref[:, :cp] = left.astype(jnp.bfloat16)
            hs3_ref[:, cp:2 * cp] = h.astype(jnp.bfloat16)
            hs3_ref[:, 2 * cp:] = right.astype(jnp.bfloat16)
            fg = jnp.dot(hs3_ref[...], wfg_ref[i],
                         preferred_element_type=jnp.float32) + bfg_ref[i]
        else:
            # v5e: 128-deep MXU -> 3 accumulating K=Cp matmuls, no extra
            # (M, 3*Cp) store/load traffic through the single vst slot.
            w = wfg_ref[i]                                        # (3*Cp, 2*Cp)
            fg = (jnp.dot(left.astype(jnp.bfloat16), w[:cp],
                          preferred_element_type=jnp.float32)
                  + jnp.dot(h.astype(jnp.bfloat16), w[cp:2 * cp],
                            preferred_element_type=jnp.float32)
                  + jnp.dot(right.astype(jnp.bfloat16), w[2 * cp:],
                            preferred_element_type=jnp.float32)
                  + bfg_ref[i])

        f = fg[:, :cp]
        g = fg[:, cp:]
        if bf16_act:
            z = jnp.tanh(f.astype(jnp.bfloat16)) * jax.nn.sigmoid(g.astype(jnp.bfloat16))
        else:
            z = (jnp.tanh(f) * jax.nn.sigmoid(g)).astype(jnp.bfloat16)
        h = jnp.dot(z, wrt_ref[i], preferred_element_type=jnp.float32) + br_ref[i]
        res = res + h

    out_ref[...] = res.reshape(bblk, T, cp).astype(out_ref.dtype)


# ------------------------------ JAX wrapper ----------------------------------
def wave_block_pallas(x_nct, params, num_rates, target_rows=2048):
    """x_nct: (B, C_in, T) float32, PyTorch NCW layout. Returns (B, C_out, T) f32."""
    B, C_in, T = x_nct.shape
    C_out = params["w0"].shape[0]
    Cp = _round_up(C_out, LANE)

    flags = _tpu_flags()
    fuse_taps = flags["fuse_taps"]
    bf16_act = flags["bf16_act"]

    bblk, B_pad = _choose_batch_tiling(B, T, target_rows)
    grid = (B_pad // bblk,)

    # If C_in is far below a lane, do convs[0] in plain XLA so the kernel input
    # is already the lane-dense h tensor (avoids a ~all-padding first matmul and
    # extra transpose/pad HBM passes).
    apply_conv0 = C_in >= LANE

    def pad_mat(w, rows, cols):
        return jnp.pad(w, ((0, rows - w.shape[0]), (0, cols - w.shape[1])))

    if apply_conv0:
        Cp_in = _round_up(C_in, LANE)
        x_btc = jnp.transpose(x_nct, (0, 2, 1)).astype(jnp.float32)
        xin = jnp.pad(x_btc, ((0, B_pad - B), (0, 0),
                              (0, Cp_in - C_in))).astype(jnp.bfloat16)
        w0t = pad_mat(params["w0"][:, :, 0].T, Cp_in, Cp).astype(jnp.bfloat16)
        b0 = jnp.pad(params["b0"], (0, Cp - C_out))[None, :].astype(jnp.float32)
        lane_in = Cp_in
    else:
        w0_2d = params["w0"][:, :, 0]                              # (C_out, C_in)
        h = jnp.einsum("bct,oc->bto", x_nct, w0_2d) + params["b0"][None, None, :]
        xin = jnp.pad(h, ((0, B_pad - B), (0, 0),
                          (0, Cp - C_out))).astype(jnp.bfloat16)
        lane_in = Cp

    # Per rate: fuse the 3 taps of filter & gate convs into one (3*Cp, 2*Cp) weight.
    wfg_list, bfg_list, wrt_list, br_list = [], [], [], []
    for i in range(num_rates):
        taps_f = [pad_mat(params["wf"][i][:, :, k].T, Cp, Cp) for k in range(3)]
        taps_g = [pad_mat(params["wg"][i][:, :, k].T, Cp, Cp) for k in range(3)]
        wf_i = jnp.concatenate(taps_f, axis=0)                     # (3*Cp, Cp)
        wg_i = jnp.concatenate(taps_g, axis=0)                     # (3*Cp, Cp)
        wfg_list.append(jnp.concatenate([wf_i, wg_i], axis=1))     # (3*Cp, 2*Cp)
        bf_i = jnp.pad(params["bf"][i], (0, Cp - C_out))
        bg_i = jnp.pad(params["bg"][i], (0, Cp - C_out))
        bfg_list.append(jnp.concatenate([bf_i, bg_i])[None, :])    # (1, 2*Cp)
        wrt_list.append(pad_mat(params["wr"][i][:, :, 0].T, Cp, Cp))
        br_list.append(jnp.pad(params["br"][i], (0, Cp - C_out))[None, :])

    wfg = jnp.stack(wfg_list).astype(jnp.bfloat16)                 # (R, 3*Cp, 2*Cp)
    bfg = jnp.stack(bfg_list).astype(jnp.float32)                  # (R, 1, 2*Cp)
    wrt = jnp.stack(wrt_list).astype(jnp.bfloat16)                 # (R, Cp, Cp)
    br = jnp.stack(br_list).astype(jnp.float32)                    # (R, 1, Cp)

    def rep_spec(shape):
        zeros = (0,) * len(shape)
        return pl.BlockSpec(shape, lambda b, _z=zeros: _z)

    inputs = [xin]
    in_specs = [pl.BlockSpec((bblk, T, lane_in), lambda b: (b, 0, 0))]
    if apply_conv0:
        inputs += [w0t, b0]
        in_specs += [rep_spec(w0t.shape), rep_spec(b0.shape)]
    inputs += [wfg, bfg, wrt, br]
    in_specs += [rep_spec(wfg.shape), rep_spec(bfg.shape),
                 rep_spec(wrt.shape), rep_spec(br.shape)]

    scratch_shapes = ([pltpu.VMEM((bblk * T, 3 * Cp), jnp.bfloat16)]
                      if fuse_taps else [])

    out_btc = pl.pallas_call(
        functools.partial(_wave_block_kernel, num_rates, fuse_taps,
                          bf16_act, apply_conv0),
        out_shape=jax.ShapeDtypeStruct((B_pad, T, Cp), jnp.bfloat16),
        grid=grid,
        in_specs=in_specs,
        out_specs=pl.BlockSpec((bblk, T, Cp), lambda b: (b, 0, 0)),
        scratch_shapes=scratch_shapes,
        compiler_params=pltpu.CompilerParams(
            dimension_semantics=("parallel",),
            vmem_limit_bytes=48 * 1024 * 1024,
        ),
    )(*inputs)

    # Strip batch/channel padding, back to PyTorch NCW, f32.
    return jnp.transpose(out_btc[:B, :, :C_out].astype(jnp.float32), (0, 2, 1))


# ------------------------ pure-JAX reference (for check) ---------------------
def wave_block_ref(x, params, num_rates):
    def conv1d(x, w, b, dilation=1, padding=0):
        y = lax.conv_general_dilated(
            x, w, window_strides=(1,), padding=[(padding, padding)],
            rhs_dilation=(dilation,), dimension_numbers=("NCW", "OIW", "NCW"))
        return y + b[None, :, None]

    h = conv1d(x, params["w0"], params["b0"])
    res = h
    for i in range(num_rates):
        d = 2 ** i
        f = jnp.tanh(conv1d(h, params["wf"][i], params["bf"][i], dilation=d, padding=d))
        g = jax.nn.sigmoid(conv1d(h, params["wg"][i], params["bg"][i], dilation=d, padding=d))
        h = conv1d(f * g, params["wr"][i], params["br"][i])
        res = res + h
    return res


# --------------------------------- main --------------------------------------
if __name__ == "__main__":
    B, C_in, C_out, T = 2, 4, 16, 16
    num_rates = 3

    key = jax.random.PRNGKey(0)
    keys = iter(jax.random.split(key, 64))

    def nrm(shape):
        return 0.1 * jax.random.normal(next(keys), shape, jnp.float32)

    # Deterministic synthetic parameters (same shapes as the PyTorch module).
    params = {
        "w0": nrm((C_out, C_in, 1)), "b0": nrm((C_out,)),
        "wf": [nrm((C_out, C_out, 3)) for _ in range(num_rates)],
        "bf": [nrm((C_out,)) for _ in range(num_rates)],
        "wg": [nrm((C_out, C_out, 3)) for _ in range(num_rates)],
        "bg": [nrm((C_out,)) for _ in range(num_rates)],
        "wr": [nrm((C_out, C_out, 1)) for _ in range(num_rates)],
        "br": [nrm((C_out,)) for _ in range(num_rates)],
    }

    x = jax.random.normal(next(keys), (B, C_in, T), jnp.float32)   # NCW like PyTorch

    out = wave_block_pallas(x, params, num_rates)
    out = jax.block_until_ready(out)

    ref = jax.block_until_ready(wave_block_ref(x, params, num_rates))
    assert out.shape == (B, C_out, T)
    max_err = float(jnp.max(jnp.abs(out - ref)))
    # bf16 MXU operands, bf16 gate activations (v6e/v7x) and bf16 output store
    # with f32 accumulation -> looser tolerance than pure f32.
    assert jnp.allclose(out, ref, atol=4e-2, rtol=4e-2), max_err

    print("KERNEL_OK")
</pallas_src>

<mosaic_0001>
module attributes {stable_mosaic.version = 11 : i64} {
  func.func @_wave_block_kernel(%arg0: i32, %arg1: memref<1x16x128xbf16, #tpu.memory_space<vmem>>, %arg2: memref<3x384x256xbf16, #tpu.memory_space<vmem>>, %arg3: memref<3x1x256xf32, #tpu.memory_space<vmem>>, %arg4: memref<3x128x128xbf16, #tpu.memory_space<vmem>>, %arg5: memref<3x1x128xf32, #tpu.memory_space<vmem>>, %arg6: memref<1x16x128xbf16, #tpu.memory_space<vmem>>, %arg7: memref<16x384xbf16, #tpu.memory_space<vmem>>) attributes {dimension_semantics = [#tpu.dimension_semantics<parallel>], iteration_bounds = array<i64: 2>, scalar_prefetch = 0 : i64, scratch_operands = 1 : i64, tpu.core_type = #tpu.core_type<tc>, window_params = [{transform_indices = @transform_0, window_bounds = array<i64: 1, 16, 128>}, {pipeline_mode = #tpu.pipeline_mode<synchronous>, transform_indices = @transform_1, window_bounds = array<i64: 3, 384, 256>}, {pipeline_mode = #tpu.pipeline_mode<synchronous>, transform_indices = @transform_2, window_bounds = array<i64: 3, 1, 256>}, {pipeline_mode = #tpu.pipeline_mode<synchronous>, transform_indices = @transform_3, window_bounds = array<i64: 3, 128, 128>}, {pipeline_mode = #tpu.pipeline_mode<synchronous>, transform_indices = @transform_4, window_bounds = array<i64: 3, 1, 128>}, {transform_indices = @transform_5, window_bounds = array<i64: 1, 16, 128>}]} {
    %c0 = arith.constant 0 : index
    %c0_0 = arith.constant 0 : index
    %c0_1 = arith.constant 0 : index
    %0 = vector.load %arg1[%c0, %c0_0, %c0_1] : memref<1x16x128xbf16, #tpu.memory_space<vmem>>, vector<1x16x128xbf16>
    %1 = vector.shape_cast %0 : vector<1x16x128xbf16> to vector<16x128xbf16>
    %2 = arith.extf %1 : vector<16x128xbf16> to vector<16x128xf32>
    %3 = tpu.iota {dimensions = array<i32: 0>} : vector<16x1xi32>
    %c16_i32 = arith.constant 16 : i32
    %c0_i32 = arith.constant 0 : i32
    %4 = arith.cmpi eq, %c16_i32, %c0_i32 : i32
    %c1_i32 = arith.constant 1 : i32
    %5 = arith.select %4, %c1_i32, %c16_i32 : i32
    %6 = vector.broadcast %5 : i32 to vector<16x1xi32>
    %7 = arith.remsi %3, %6 : vector<16x1xi32>
    %c0_i32_2 = arith.constant 0 : i32
    %8 = vector.broadcast %c0_i32_2 : i32 to vector<16x1xi32>
    %9 = arith.cmpi ne, %7, %8 : vector<16x1xi32>
    %c0_i32_3 = arith.constant 0 : i32
    %10 = vector.broadcast %c0_i32_3 : i32 to vector<16x1xi32>
    %11 = arith.cmpi slt, %7, %10 : vector<16x1xi32>
    %c0_i32_4 = arith.constant 0 : i32
    %12 = arith.cmpi slt, %5, %c0_i32_4 : i32
    %13 = vector.broadcast %12 : i1 to vector<16x1xi1>
    %14 = vector.broadcast %13 : vector<16x1xi1> to vector<16x1xi1>
    %15 = arith.xori %11, %14 : vector<16x1xi1>
    %16 = arith.andi %15, %9 : vector<16x1xi1>
    %17 = vector.broadcast %5 : i32 to vector<16x1xi32>
    %18 = arith.addi %7, %17 : vector<16x1xi32>
    %19 = arith.select %16, %18, %7 : vector<16x1xi1>, vector<16x1xi32>
    %c1_i32_5 = arith.constant 1 : i32
    %20 = vector.broadcast %c1_i32_5 : i32 to vector<16x1xi32>
    %21 = arith.cmpi sge, %19, %20 : vector<16x1xi32>
    %c1_i32_6 = arith.constant 1 : i32
    %22 = tpu.dynamic_rotate %2 by %c1_i32_6 dim 0 : vector<16x128xf32>, i32 -> vector<16x128xf32>
    %cst = arith.constant 0.000000e+00 : f32
    %23 = vector.shape_cast %21 : vector<16x1xi1> to vector<16x1xi1>
    %24 = vector.broadcast %23 : vector<16x1xi1> to vector<16x128xi1>
    %25 = vector.broadcast %cst : f32 to vector<16x128xf32>
    %26 = arith.select %24, %22, %25 : vector<16x128xi1>, vector<16x128xf32>
    %c1_i32_7 = arith.constant 1 : i32
    %27 = vector.broadcast %c1_i32_7 : i32 to vector<16x1xi32>
    %28 = arith.addi %19, %27 : vector<16x1xi32>
    %c16_i32_8 = arith.constant 16 : i32
    %29 = vector.broadcast %c16_i32_8 : i32 to vector<16x1xi32>
    %30 = arith.cmpi slt, %28, %29 : vector<16x1xi32>
    %c15_i32 = arith.constant 15 : i32
    %31 = tpu.dynamic_rotate %2 by %c15_i32 dim 0 : vector<16x128xf32>, i32 -> vector<16x128xf32>
    %cst_9 = arith.constant 0.000000e+00 : f32
    %32 = vector.shape_cast %30 : vector<16x1xi1> to vector<16x1xi1>
    %33 = vector.broadcast %32 : vector<16x1xi1> to vector<16x128xi1>
    %34 = vector.broadcast %cst_9 : f32 to vector<16x128xf32>
    %35 = arith.select %33, %31, %34 : vector<16x128xi1>, vector<16x128xf32>
    %36 = arith.truncf %26 : vector<16x128xf32> to vector<16x128xbf16>
    %c0_10 = arith.constant 0 : index
    %c0_11 = arith.constant 0 : index
    %37 = vector.load %arg7[%c0_10, %c0_11] : memref<16x384xbf16, #tpu.memory_space<vmem>>, vector<16x128xbf16>
    tpu.vector_store %arg7[%c0_10, %c0_11], %36 {strides = array<i32>} : memref<16x384xbf16, #tpu.memory_space<vmem>>, vector<16x128xbf16>,
    %38 = arith.truncf %2 : vector<16x128xf32> to vector<16x128xbf16>
    %c0_12 = arith.constant 0 : index
    %c128 = arith.constant 128 : index
    %39 = vector.load %arg7[%c0_12, %c128] : memref<16x384xbf16, #tpu.memory_space<vmem>>, vector<16x128xbf16>
    tpu.vector_store %arg7[%c0_12, %c128], %38 {strides = array<i32>} : memref<16x384xbf16, #tpu.memory_space<vmem>>, vector<16x128xbf16>,
    %40 = arith.truncf %35 : vector<16x128xf32> to vector<16x128xbf16>
    %c0_13 = arith.constant 0 : index
    %c256 = arith.constant 256 : index
    %41 = vector.load %arg7[%c0_13, %c256] : memref<16x384xbf16, #tpu.memory_space<vmem>>, vector<16x128xbf16>
    tpu.vector_store %arg7[%c0_13, %c256], %40 {strides = array<i32>} : memref<16x384xbf16, #tpu.memory_space<vmem>>, vector<16x128xbf16>,
    %c0_14 = arith.constant 0 : index
    %c0_15 = arith.constant 0 : index
    %42 = vector.load %arg7[%c0_14, %c0_15] : memref<16x384xbf16, #tpu.memory_space<vmem>>, vector<16x384xbf16>
    %c0_16 = arith.constant 0 : index
    %c0_17 = arith.constant 0 : index
    %c0_18 = arith.constant 0 : index
    %43 = vector.load %arg2[%c0_16, %c0_17, %c0_18] : memref<3x384x256xbf16, #tpu.memory_space<vmem>>, vector<1x384x256xbf16>
    %44 = vector.shape_cast %43 : vector<1x384x256xbf16> to vector<384x256xbf16>
    %cst_19 = arith.constant dense<0.000000e+00> : vector<16x256xf32>
    %45 = tpu.matmul %42, %44, %cst_19 {dimension_numbers = #tpu.dot_dimension_numbers<[1], [0], [0], [1], [0, 0, 1, 1], [], []>} : vector<16x384xbf16>, vector<384x256xbf16>, vector<16x256xf32> -> vector<16x256xf32>
    %c0_20 = arith.constant 0 : index
    %c0_21 = arith.constant 0 : index
    %c0_22 = arith.constant 0 : index
    %46 = vector.load %arg3[%c0_20, %c0_21, %c0_22] : memref<3x1x256xf32, #tpu.memory_space<vmem>>, vector<1x1x256xf32>
    %47 = vector.shape_cast %46 : vector<1x1x256xf32> to vector<1x256xf32>
    %48 = vector.broadcast %47 : vector<1x256xf32> to vector<16x256xf32>
    %49 = arith.addf %45, %48 : vector<16x256xf32>
    %50 = vector.extract_strided_slice %49 {offsets = [0, 0], sizes = [16, 128], strides = [1, 1]} : vector<16x256xf32> to vector<16x128xf32>
    %51 = vector.extract_strided_slice %49 {offsets = [0, 128], sizes = [16, 128], strides = [1, 1]} : vector<16x256xf32> to vector<16x128xf32>
    %52 = arith.truncf %50 : vector<16x128xf32> to vector<16x128xbf16>
    %53 = math.tanh %52 : vector<16x128xbf16>
    %54 = arith.truncf %51 : vector<16x128xf32> to vector<16x128xbf16>
    %55 = arith.negf %54 : vector<16x128xbf16>
    %56 = math.exp %55 : vector<16x128xbf16>
    %cst_23 = arith.constant 1.000000e+00 : bf16
    %57 = vector.broadcast %cst_23 : bf16 to vector<16x128xbf16>
    %58 = arith.addf %57, %56 : vector<16x128xbf16>
    %59 = arith.divf %57, %58 : vector<16x128xbf16>
    %60 = arith.mulf %53, %59 : vector<16x128xbf16>
    %c0_24 = arith.constant 0 : index
    %c0_25 = arith.constant 0 : index
    %c0_26 = arith.constant 0 : index
    %61 = vector.load %arg4[%c0_24, %c0_25, %c0_26] : memref<3x128x128xbf16, #tpu.memory_space<vmem>>, vector<1x128x128xbf16>
    %62 = vector.shape_cast %61 : vector<1x128x128xbf16> to vector<128x128xbf16>
    %cst_27 = arith.constant dense<0.000000e+00> : vector<16x128xf32>
    %63 = tpu.matmul %60, %62, %cst_27 {dimension_numbers = #tpu.dot_dimension_numbers<[1], [0], [0], [1], [0, 0, 1, 1], [], []>} : vector<16x128xbf16>, vector<128x128xbf16>, vector<16x128xf32> -> vector<16x128xf32>
    %c0_28 = arith.constant 0 : index
    %c0_29 = arith.constant 0 : index
    %c0_30 = arith.constant 0 : index
    %64 = vector.load %arg5[%c0_28, %c0_29, %c0_30] : memref<3x1x128xf32, #tpu.memory_space<vmem>>, vector<1x1x128xf32>
    %65 = vector.shape_cast %64 : vector<1x1x128xf32> to vector<1x128xf32>
    %66 = vector.broadcast %65 : vector<1x128xf32> to vector<16x128xf32>
    %67 = arith.addf %63, %66 : vector<16x128xf32>
    %68 = arith.addf %2, %67 : vector<16x128xf32>
    %c2_i32 = arith.constant 2 : i32
    %69 = vector.broadcast %c2_i32 : i32 to vector<16x1xi32>
    %70 = arith.cmpi sge, %19, %69 : vector<16x1xi32>
    %c2_i32_31 = arith.constant 2 : i32
    %71 = tpu.dynamic_rotate %67 by %c2_i32_31 dim 0 : vector<16x128xf32>, i32 -> vector<16x128xf32>
    %cst_32 = arith.constant 0.000000e+00 : f32
    %72 = vector.shape_cast %70 : vector<16x1xi1> to vector<16x1xi1>
    %73 = vector.broadcast %72 : vector<16x1xi1> to vector<16x128xi1>
    %74 = vector.broadcast %cst_32 : f32 to vector<16x128xf32>
    %75 = arith.select %73, %71, %74 : vector<16x128xi1>, vector<16x128xf32>
    %c2_i32_33 = arith.constant 2 : i32
    %76 = vector.broadcast %c2_i32_33 : i32 to vector<16x1xi32>
    %77 = arith.addi %19, %76 : vector<16x1xi32>
    %c16_i32_34 = arith.constant 16 : i32
    %78 = vector.broadcast %c16_i32_34 : i32 to vector<16x1xi32>
    %79 = arith.cmpi slt, %77, %78 : vector<16x1xi32>
    %c14_i32 = arith.constant 14 : i32
    %80 = tpu.dynamic_rotate %67 by %c14_i32 dim 0 : vector<16x128xf32>, i32 -> vector<16x128xf32>
    %cst_35 = arith.constant 0.000000e+00 : f32
    %81 = vector.shape_cast %79 : vector<16x1xi1> to vector<16x1xi1>
    %82 = vector.broadcast %81 : vector<16x1xi1> to vector<16x128xi1>
    %83 = vector.broadcast %cst_35 : f32 to vector<16x128xf32>
    %84 = arith.select %82, %80, %83 : vector<16x128xi1>, vector<16x128xf32>
    %85 = arith.truncf %75 : vector<16x128xf32> to vector<16x128xbf16>
    %c0_36 = arith.constant 0 : index
    %c0_37 = arith.constant 0 : index
    %86 = vector.load %arg7[%c0_36, %c0_37] : memref<16x384xbf16, #tpu.memory_space<vmem>>, vector<16x128xbf16>
    tpu.vector_store %arg7[%c0_36, %c0_37], %85 {strides = array<i32>} : memref<16x384xbf16, #tpu.memory_space<vmem>>, vector<16x128xbf16>,
    %87 = arith.truncf %67 : vector<16x128xf32> to vector<16x128xbf16>
    %c0_38 = arith.constant 0 : index
    %c128_39 = arith.constant 128 : index
    %88 = vector.load %arg7[%c0_38, %c128_39] : memref<16x384xbf16, #tpu.memory_space<vmem>>, vector<16x128xbf16>
    tpu.vector_store %arg7[%c0_38, %c128_39], %87 {strides = array<i32>} : memref<16x384xbf16, #tpu.memory_space<vmem>>, vector<16x128xbf16>,
    %89 = arith.truncf %84 : vector<16x128xf32> to vector<16x128xbf16>
    %c0_40 = arith.constant 0 : index
    %c256_41 = arith.constant 256 : index
    %90 = vector.load %arg7[%c0_40, %c256_41] : memref<16x384xbf16, #tpu.memory_space<vmem>>, vector<16x128xbf16>
    tpu.vector_store %arg7[%c0_40, %c256_41], %89 {strides = array<i32>} : memref<16x384xbf16, #tpu.memory_space<vmem>>, vector<16x128xbf16>,
    %c0_42 = arith.constant 0 : index
    %c0_43 = arith.constant 0 : index
    %91 = vector.load %arg7[%c0_42, %c0_43] : memref<16x384xbf16, #tpu.memory_space<vmem>>, vector<16x384xbf16>
    %c1 = arith.constant 1 : index
    %c0_44 = arith.constant 0 : index
    %c0_45 = arith.constant 0 : index
    %92 = vector.load %arg2[%c1, %c0_44, %c0_45] : memref<3x384x256xbf16, #tpu.memory_space<vmem>>, vector<1x384x256xbf16>
    %93 = vector.shape_cast %92 : vector<1x384x256xbf16> to vector<384x256xbf16>
    %cst_46 = arith.constant dense<0.000000e+00> : vector<16x256xf32>
    %94 = tpu.matmul %91, %93, %cst_46 {dimension_numbers = #tpu.dot_dimension_numbers<[1], [0], [0], [1], [0, 0, 1, 1], [], []>} : vector<16x384xbf16>, vector<384x256xbf16>, vector<16x256xf32> -> vector<16x256xf32>
    %c1_47 = arith.constant 1 : index
    %c0_48 = arith.constant 0 : index
    %c0_49 = arith.constant 0 : index
    %95 = vector.load %arg3[%c1_47, %c0_48, %c0_49] : memref<3x1x256xf32, #tpu.memory_space<vmem>>, vector<1x1x256xf32>
    %96 = vector.shape_cast %95 : vector<1x1x256xf32> to vector<1x256xf32>
    %97 = vector.broadcast %96 : vector<1x256xf32> to vector<16x256xf32>
    %98 = arith.addf %94, %97 : vector<16x256xf32>
    %99 = vector.extract_strided_slice %98 {offsets = [0, 0], sizes = [16, 128], strides = [1, 1]} : vector<16x256xf32> to vector<16x128xf32>
    %100 = vector.extract_strided_slice %98 {offsets = [0, 128], sizes = [16, 128], strides = [1, 1]} : vector<16x256xf32> to vector<16x128xf32>
    %101 = arith.truncf %99 : vector<16x128xf32> to vector<16x128xbf16>
    %102 = math.tanh %101 : vector<16x128xbf16>
    %103 = arith.truncf %100 : vector<16x128xf32> to vector<16x128xbf16>
    %104 = arith.negf %103 : vector<16x128xbf16>
    %105 = math.exp %104 : vector<16x128xbf16>
    %cst_50 = arith.constant 1.000000e+00 : bf16
    %106 = vector.broadcast %cst_50 : bf16 to vector<16x128xbf16>
    %107 = arith.addf %106, %105 : vector<16x128xbf16>
    %108 = arith.divf %106, %107 : vector<16x128xbf16>
    %109 = arith.mulf %102, %108 : vector<16x128xbf16>
    %c1_51 = arith.constant 1 : index
    %c0_52 = arith.constant 0 : index
    %c0_53 = arith.constant 0 : index
    %110 = vector.load %arg4[%c1_51, %c0_52, %c0_53] : memref<3x128x128xbf16, #tpu.memory_space<vmem>>, vector<1x128x128xbf16>
    %111 = vector.shape_cast %110 : vector<1x128x128xbf16> to vector<128x128xbf16>
    %cst_54 = arith.constant dense<0.000000e+00> : vector<16x128xf32>
    %112 = tpu.matmul %109, %111, %cst_54 {dimension_numbers = #tpu.dot_dimension_numbers<[1], [0], [0], [1], [0, 0, 1, 1], [], []>} : vector<16x128xbf16>, vector<128x128xbf16>, vector<16x128xf32> -> vector<16x128xf32>
    %c1_55 = arith.constant 1 : index
    %c0_56 = arith.constant 0 : index
    %c0_57 = arith.constant 0 : index
    %113 = vector.load %arg5[%c1_55, %c0_56, %c0_57] : memref<3x1x128xf32, #tpu.memory_space<vmem>>, vector<1x1x128xf32>
    %114 = vector.shape_cast %113 : vector<1x1x128xf32> to vector<1x128xf32>
    %115 = vector.broadcast %114 : vector<1x128xf32> to vector<16x128xf32>
    %116 = arith.addf %112, %115 : vector<16x128xf32>
    %117 = arith.addf %68, %116 : vector<16x128xf32>
    %c4_i32 = arith.constant 4 : i32
    %118 = vector.broadcast %c4_i32 : i32 to vector<16x1xi32>
    %119 = arith.cmpi sge, %19, %118 : vector<16x1xi32>
    %c4_i32_58 = arith.constant 4 : i32
    %120 = tpu.dynamic_rotate %116 by %c4_i32_58 dim 0 : vector<16x128xf32>, i32 -> vector<16x128xf32>
    %cst_59 = arith.constant 0.000000e+00 : f32
    %121 = vector.shape_cast %119 : vector<16x1xi1> to vector<16x1xi1>
    %122 = vector.broadcast %121 : vector<16x1xi1> to vector<16x128xi1>
    %123 = vector.broadcast %cst_59 : f32 to vector<16x128xf32>
    %124 = arith.select %122, %120, %123 : vector<16x128xi1>, vector<16x128xf32>
    %c4_i32_60 = arith.constant 4 : i32
    %125 = vector.broadcast %c4_i32_60 : i32 to vector<16x1xi32>
    %126 = arith.addi %19, %125 : vector<16x1xi32>
    %c16_i32_61 = arith.constant 16 : i32
    %127 = vector.broadcast %c16_i32_61 : i32 to vector<16x1xi32>
    %128 = arith.cmpi slt, %126, %127 : vector<16x1xi32>
    %c12_i32 = arith.constant 12 : i32
    %129 = tpu.dynamic_rotate %116 by %c12_i32 dim 0 : vector<16x128xf32>, i32 -> vector<16x128xf32>
    %cst_62 = arith.constant 0.000000e+00 : f32
    %130 = vector.shape_cast %128 : vector<16x1xi1> to vector<16x1xi1>
    %131 = vector.broadcast %130 : vector<16x1xi1> to vector<16x128xi1>
    %132 = vector.broadcast %cst_62 : f32 to vector<16x128xf32>
    %133 = arith.select %131, %129, %132 : vector<16x128xi1>, vector<16x128xf32>
    %134 = arith.truncf %124 : vector<16x128xf32> to vector<16x128xbf16>
    %c0_63 = arith.constant 0 : index
    %c0_64 = arith.constant 0 : index
    %135 = vector.load %arg7[%c0_63, %c0_64] : memref<16x384xbf16, #tpu.memory_space<vmem>>, vector<16x128xbf16>
    tpu.vector_store %arg7[%c0_63, %c0_64], %134 {strides = array<i32>} : memref<16x384xbf16, #tpu.memory_space<vmem>>, vector<16x128xbf16>,
    %136 = arith.truncf %116 : vector<16x128xf32> to vector<16x128xbf16>
    %c0_65 = arith.constant 0 : index
    %c128_66 = arith.constant 128 : index
    %137 = vector.load %arg7[%c0_65, %c128_66] : memref<16x384xbf16, #tpu.memory_space<vmem>>, vector<16x128xbf16>
    tpu.vector_store %arg7[%c0_65, %c128_66], %136 {strides = array<i32>} : memref<16x384xbf16, #tpu.memory_space<vmem>>, vector<16x128xbf16>,
    %138 = arith.truncf %133 : vector<16x128xf32> to vector<16x128xbf16>
    %c0_67 = arith.constant 0 : index
    %c256_68 = arith.constant 256 : index
    %139 = vector.load %arg7[%c0_67, %c256_68] : memref<16x384xbf16, #tpu.memory_space<vmem>>, vector<16x128xbf16>
    tpu.vector_store %arg7[%c0_67, %c256_68], %138 {strides = array<i32>} : memref<16x384xbf16, #tpu.memory_space<vmem>>, vector<16x128xbf16>,
    %c0_69 = arith.constant 0 : index
    %c0_70 = arith.constant 0 : index
    %140 = vector.load %arg7[%c0_69, %c0_70] : memref<16x384xbf16, #tpu.memory_space<vmem>>, vector<16x384xbf16>
    %c2 = arith.constant 2 : index
    %c0_71 = arith.constant 0 : index
    %c0_72 = arith.constant 0 : index
    %141 = vector.load %arg2[%c2, %c0_71, %c0_72] : memref<3x384x256xbf16, #tpu.memory_space<vmem>>, vector<1x384x256xbf16>
    %142 = vector.shape_cast %141 : vector<1x384x256xbf16> to vector<384x256xbf16>
    %cst_73 = arith.constant dense<0.000000e+00> : vector<16x256xf32>
    %143 = tpu.matmul %140, %142, %cst_73 {dimension_numbers = #tpu.dot_dimension_numbers<[1], [0], [0], [1], [0, 0, 1, 1], [], []>} : vector<16x384xbf16>, vector<384x256xbf16>, vector<16x256xf32> -> vector<16x256xf32>
    %c2_74 = arith.constant 2 : index
    %c0_75 = arith.constant 0 : index
    %c0_76 = arith.constant 0 : index
    %144 = vector.load %arg3[%c2_74, %c0_75, %c0_76] : memref<3x1x256xf32, #tpu.memory_space<vmem>>, vector<1x1x256xf32>
    %145 = vector.shape_cast %144 : vector<1x1x256xf32> to vector<1x256xf32>
    %146 = vector.broadcast %145 : vector<1x256xf32> to vector<16x256xf32>
    %147 = arith.addf %143, %146 : vector<16x256xf32>
    %148 = vector.extract_strided_slice %147 {offsets = [0, 0], sizes = [16, 128], strides = [1, 1]} : vector<16x256xf32> to vector<16x128xf32>
    %149 = vector.extract_strided_slice %147 {offsets = [0, 128], sizes = [16, 128], strides = [1, 1]} : vector<16x256xf32> to vector<16x128xf32>
    %150 = arith.truncf %148 : vector<16x128xf32> to vector<16x128xbf16>
    %151 = math.tanh %150 : vector<16x128xbf16>
    %152 = arith.truncf %149 : vector<16x128xf32> to vector<16x128xbf16>
    %153 = arith.negf %152 : vector<16x128xbf16>
    %154 = math.exp %153 : vector<16x128xbf16>
    %cst_77 = arith.constant 1.000000e+00 : bf16
    %155 = vector.broadcast %cst_77 : bf16 to vector<16x128xbf16>
    %156 = arith.addf %155, %154 : vector<16x128xbf16>
    %157 = arith.divf %155, %156 : vector<16x128xbf16>
    %158 = arith.mulf %151, %157 : vector<16x128xbf16>
    %c2_78 = arith.constant 2 : index
    %c0_79 = arith.constant 0 : index
    %c0_80 = arith.constant 0 : index
    %159 = vector.load %arg4[%c2_78, %c0_79, %c0_80] : memref<3x128x128xbf16, #tpu.memory_space<vmem>>, vector<1x128x128xbf16>
    %160 = vector.shape_cast %159 : vector<1x128x128xbf16> to vector<128x128xbf16>
    %cst_81 = arith.constant dense<0.000000e+00> : vector<16x128xf32>
    %161 = tpu.matmul %158, %160, %cst_81 {dimension_numbers = #tpu.dot_dimension_numbers<[1], [0], [0], [1], [0, 0, 1, 1], [], []>} : vector<16x128xbf16>, vector<128x128xbf16>, vector<16x128xf32> -> vector<16x128xf32>
    %c2_82 = arith.constant 2 : index
    %c0_83 = arith.constant 0 : index
    %c0_84 = arith.constant 0 : index
    %162 = vector.load %arg5[%c2_82, %c0_83, %c0_84] : memref<3x1x128xf32, #tpu.memory_space<vmem>>, vector<1x1x128xf32>
    %163 = vector.shape_cast %162 : vector<1x1x128xf32> to vector<1x128xf32>
    %164 = vector.broadcast %163 : vector<1x128xf32> to vector<16x128xf32>
    %165 = arith.addf %161, %164 : vector<16x128xf32>
    %166 = arith.addf %117, %165 : vector<16x128xf32>
    %167 = vector.shape_cast %166 : vector<16x128xf32> to vector<1x16x128xf32>
    %168 = arith.truncf %167 : vector<1x16x128xf32> to vector<1x16x128xbf16>
    %c0_85 = arith.constant 0 : index
    %c0_86 = arith.constant 0 : index
    %c0_87 = arith.constant 0 : index
    %169 = vector.load %arg6[%c0_85, %c0_86, %c0_87] : memref<1x16x128xbf16, #tpu.memory_space<vmem>>, vector<1x16x128xbf16>
    tpu.vector_store %arg6[%c0_85, %c0_86, %c0_87], %168 {strides = array<i32>} : memref<1x16x128xbf16, #tpu.memory_space<vmem>>, vector<1x16x128xbf16>,
    return
  }
  func.func @transform_0(%arg0: i32) -> (i32, i32, i32) {
    %c0_i32 = arith.constant 0 : i32
    %c0_i32_0 = arith.constant 0 : i32
    %c0_i32_1 = arith.constant 0 : i32
    return %arg0, %c0_i32, %c0_i32_0 : i32, i32, i32
  }
  func.func @transform_1(%arg0: i32) -> (i32, i32, i32) {
    %c0_i32 = arith.constant 0 : i32
    %c0_i32_0 = arith.constant 0 : i32
    %c0_i32_1 = arith.constant 0 : i32
    %c0_i32_2 = arith.constant 0 : i32
    return %c0_i32, %c0_i32_0, %c0_i32_1 : i32, i32, i32
  }
  func.func @transform_2(%arg0: i32) -> (i32, i32, i32) {
    %c0_i32 = arith.constant 0 : i32
    %c0_i32_0 = arith.constant 0 : i32
    %c0_i32_1 = arith.constant 0 : i32
    %c0_i32_2 = arith.constant 0 : i32
    return %c0_i32, %c0_i32_0, %c0_i32_1 : i32, i32, i32
  }
  func.func @transform_3(%arg0: i32) -> (i32, i32, i32) {
    %c0_i32 = arith.constant 0 : i32
    %c0_i32_0 = arith.constant 0 : i32
    %c0_i32_1 = arith.constant 0 : i32
    %c0_i32_2 = arith.constant 0 : i32
    return %c0_i32, %c0_i32_0, %c0_i32_1 : i32, i32, i32
  }
  func.func @transform_4(%arg0: i32) -> (i32, i32, i32) {
    %c0_i32 = arith.constant 0 : i32
    %c0_i32_0 = arith.constant 0 : i32
    %c0_i32_1 = arith.constant 0 : i32
    %c0_i32_2 = arith.constant 0 : i32
    return %c0_i32, %c0_i32_0, %c0_i32_1 : i32, i32, i32
  }
  func.func @transform_5(%arg0: i32) -> (i32, i32, i32) {
    %c0_i32 = arith.constant 0 : i32
    %c0_i32_0 = arith.constant 0 : i32
    %c0_i32_1 = arith.constant 0 : i32
    return %arg0, %c0_i32, %c0_i32_0 : i32, i32, i32
  }
}

</mosaic_0001>

<bundles_post_ra>
// kernel: tpu_custom_call.1
= control target key start
LH: loop header
LB: loop body
LE: loop exit
PB: predicated region body
PF: predicated region fallthrough
CT: control target
= control target key end

     0   :  { %10 = vsyncpa [#allocation4], 0  ;;  %s3473_s0 = inlined_call_operand.hbm [shape: bf16[2,16,128], index: 0, kind: input, shape index: {}]   ;;  %s3474_s1 = inlined_call_operand.hbm [shape: bf16[3,384,256], index: 1, kind: input, shape index: {}]   ;;  %s3475_s2 = inlined_call_operand.hbm [shape: f32[3,1,256], index: 2, kind: input, shape index: {}]   ;;  %s3476_s3 = inlined_call_operand.hbm [shape: bf16[3,128,128], index: 3, kind: input, shape index: {}]   ;;  %s3477_s4 = inlined_call_operand.vmem [shape: f32[3,1,128], index: 4, kind: input, shape index: {}]   ;;  %s3478_s5 = inlined_call_operand.hbm [shape: bf16[2,16,128], index: 5, kind: output, shape index: {}]  }
   0x1   :  { %12 = vsyncpa [#allocation4 + $0x1], 0 }
   0x2   :  { %13 = vsyncpa [#allocation7], 0 }
   0x3   :  { %14 = vsyncpa [#allocation10], 0 }
   0x4   :  { %15 = vsyncpa [#allocation5], 0 }
   0x5   :  { %17 = vsyncpa [#allocation5 + $0x1], 0  ;;  %s3143_s18 = smov 0   ;;  %s3145_s19 = smov 0  }
   0x6   :  { %s3147_s20 = smov 0   ;;  %s3149_s21 = smov 0  }
   0x7 LB: > { %s3164_s22 = sadd.s32 4294967295, %s3095_s21   ;;  %s2208_s23 = sadd.s32 4294967294, %s3095_s21   ;;  %s3095_s21 = sphi %s3149_s21, %s3504_s21   ;;  %s3091_s20 = sphi %s3147_s20, %s3503_s20   ;;  %s3087_s19 = sphi %s3145_s19, %s3502_s19   ;;  %s3083_s18 = sphi %s3143_s18, %s3501_s18  }
   0x8   : > { %p43_p0 = scmp.ne.s32.totalorder %s3087_s19, %s3083_s18  ;;  %p3479_p1 = scmp.eq.s32.totalorder %s3164_s22, 0 }
   0x9   : > { %p157_p3 = scmp.eq.s32.totalorder %s2208_s23, 1  ;;  %p2209_p5 = scmp.ge.s32.totalorder %s3095_s21, 1 }
   0xa   : > { %p3173_p4 = por %p3479_p1, %p43_p0  ;;  %p164_p7 = scmp.lt.s32.totalorder %s3095_s21, 3 }
   0xb   : > { %p3178_p6 = por %p157_p3, %p43_p0  ;;  %s3097_s27 = smov [#allocation6]  }
   0xc   : > { %s3484_s24 = scalar_select %p3173_p4, 1, 0 }
   0xd   : > { %s3485_s25 = scalar_select %p3178_p6, 1, 0 }
   0xe   : > { %p3183_p8 = pnand %p2209_p5, %p164_p7  ;;  %s176_s28 = sshll.u32 %s3097_s27, 4  ;;  %s177_s28 = int_to_ptr.vmem [resolvable:$true] %s176_s28 }
   0xf   : > { %s3098_s30 = smov [#allocation8]   ;;  %s2928_s7 = scalar_lea.vmem %s177_s28, 18432 }
  0x10   : > { %s3486_s26 = scalar_select %p3183_p8, 1, 0 }
  0x11   : > { %p2581_p9 = pneg %p3183_p8  ;;  %s189_s6 = sshll.u32 %s3098_s30, 4  ;;  %s190_s6 = int_to_ptr.vmem [resolvable:$true] %s189_s6 }
  0x12   : > { %p2929_p13 = scmp.ne.s32.totalorder %s177_s28, %s2928_s7  ;;  %p2936_p5 = scmp.lt.s32.totalorder %s177_s28, %s177_s28 }
  0x13   : > { %p3192_p11 = pnand %p2581_p9, %p3479_p1  ;;  %p2937_p7 = scmp.lt.s32.totalorder %s2928_s7, %s2928_s7 }
  0x15   : > { %p2919_p12 = pneg %p3192_p11  ;;  %p2938_p10 = por %p2937_p7, %p2936_p5 }
  0x17   : > { %p2931_p0 = pnand %p2929_p13, %p2919_p12 }
  0x19   : > { %p2932_p3 = pneg %p2931_p0 }
  0x1b   : > { %p2939_p9 = pnand %p2938_p10, %p2932_p3 }
  0x1d   : > { %2942 = shalt.err (!%p2939_p9)
}
  0x1e   : > { %s3099_s8 = smov 128   ;;  %s3100_s9 = smov 8  }
  0x1f   : > { %2584 = dma.hbm_to_vmem [thread:$0]  (!%p3192_p11), %s3474_s1, 18432, %s177_s28, [#allocation7], %s3099_s8, %s3099_s8, %s3100_s9  }
  0x20   : > { %s2954_s12 = scalar_lea.vmem %s190_s6, 96  ;;  %p2962_p2 = scmp.lt.s32.totalorder %s190_s6, %s190_s6 }
  0x21   : > { %p2955_p1 = scmp.ne.s32.totalorder %s190_s6, %s2954_s12  ;;  %p2963_p6 = scmp.lt.s32.totalorder %s2954_s12, %s2954_s12 }
  0x23   : > { %p2957_p13 = pnand %p2955_p1, %p2919_p12  ;;  %p2964_p5 = por %p2963_p6, %p2962_p2 }
  0x25   : > { %p2958_p0 = pneg %p2957_p13 }
  0x27   : > { %p2965_p10 = pnand %p2964_p5, %p2958_p0 }
  0x29   : > { %2968 = shalt.err (!%p2965_p10)
}
  0x2a   : > { %s3101_s13 = smov 32   ;;  %s3102_s14 = smov 2  }
  0x2b   : > { %2587 = dma.hbm_to_vmem [thread:$0]  (!%p3192_p11), %s3475_s2, 96, %s190_s6, [#allocation7], %s3101_s13, %s3101_s13, %s3102_s14  }
  0x2c   : > { %s3103_s17 = smov [#allocation9]  }
  0x2d   : > { %s202_s23 = sshll.u32 %s3103_s17, 4  ;;  %s203_s23 = int_to_ptr.vmem [resolvable:$true] %s202_s23 }
  0x2e   : > { %s2980_s27 = scalar_lea.vmem %s203_s23, 3072  ;;  %p2988_p6 = scmp.lt.s32.totalorder %s203_s23, %s203_s23 }
  0x2f   : > { %p2981_p1 = scmp.ne.s32.totalorder %s203_s23, %s2980_s27  ;;  %p2989_p7 = scmp.lt.s32.totalorder %s2980_s27, %s2980_s27 }
  0x31   : > { %p2983_p3 = pnand %p2981_p1, %p2919_p12  ;;  %p2990_p9 = por %p2989_p7, %p2988_p6 }
  0x33   : > { %p2984_p2 = pneg %p2983_p3 }
  0x35   : > { %p2991_p13 = pnand %p2990_p9, %p2984_p2 }
  0x37   : > { %2994 = shalt.err (!%p2991_p13)
}
  0x38   : > { %s3480_s28 = smov 64   ;;  %s3105_s30 = smov 4  }
  0x39   : > { %2590 = dma.hbm_to_vmem [thread:$0]  (!%p3192_p11), %s3476_s3, 3072, %s203_s23, [#allocation10], %s3480_s28, %s3480_s28, %s3105_s30  }
  0x3a   : > { %s3226_s8 = sadd.s32 1, %s3095_s21   ;;  %s30_s10 = sadd.s32 1, %s3091_s20 }
  0x3b   : > { %s27_s9 = ssub.s32 %s3095_s21, %s3226_s8  ;;  %p37_p0 = scmp.ne.s32.totalorder %s3091_s20, %s3087_s19 }
  0x3c   : > { %p28_p12 = scmp.eq.s32.totalorder %s27_s9, 0  ;;  %p38_p5 = scmp.eq.s32.totalorder %s3095_s21, 0 }
  0x3d   : > { %p2602_p10 = scmp.lt.s32.totalorder %s3095_s21, 2  ;;  %p3488_p3 = scmp.eq.s32.totalorder %s3164_s22, 1 }
  0x3e   : > { %s3236_s11 = scalar_select %p28_p12, %s3091_s20, %s30_s10  }
  0x3f   : > { %p39_p1 = por %p38_p5, %p37_p0  ;;  %p3240_p2 = por %p3488_p3, %p37_p0 }
  0x40   : > { %s219_s12 = sand.u32 1, %s3091_s20   ;;  %s2431_s13 = sshll.u32 %s3095_s21, 7 }
  0x41   : > { %s3489_s29 = scalar_select %p3240_p2, 1, 0 }
  0x42   : > { %s2214_s14 = sshll.u32 %s219_s12, 3  ;;  %s3249_s17 = scalar_lea.hbm %s3473_s0, %s2431_s13 }
  0x43   : > { %s223_s23 = scalar_lea.vmem [#allocation3], %s2214_s14  ;;  %p3251_p11 = pnand %p2602_p10, %p39_p1 }
  0x44   : > { %s230_s27 = sshll.u32 %s223_s23, 4  ;;  %s3257_s7 = scalar_lea.sflag [#allocation4], %s219_s12  ;;  %s3255_s27 = int_to_ptr.vmem [resolvable:$true] %s230_s27 }
  0x45   : > { %s2995_s9 = scalar_lea.hbm %s3249_s17, 128  ;;  %p2997_p7 = pneg %p3251_p11 }
  0x46   : > { %p2996_p6 = scmp.ne.s32.totalorder %s3249_s17, %s2995_s9  ;;  %s3000_s14 = scalar_lea.hbm %s3473_s0, 256 }
  0x47   : > { %p3001_p12 = scmp.lt.s32.totalorder %s3249_s17, %s3473_s0  ;;  %p3002_p0 = scmp.lt.s32.totalorder %s3000_s14, %s2995_s9 }
  0x48   : > { %p2998_p9 = pnand %p2997_p7, %p2996_p6 }
  0x49   : > { %p3003_p5 = por %p3002_p0, %p3001_p12 }
  0x4a   : > { %p2999_p13 = pneg %p2998_p9 }
  0x4c   : > { %p3004_p10 = pnand %p3003_p5, %p2999_p13 }
  0x4e   : > { %3007 = shalt.err (!%p3004_p10)
}
  0x4f   : > { %s3008_s12 = scalar_lea.vmem %s3255_s27, 128  ;;  %s3106_s23 = smov [#allocation3]  }
  0x50   : > { %p3009_p1 = scmp.ne.s32.totalorder %s3255_s27, %s3008_s12  ;;  %s3013_s28 = sshll.u32 %s3106_s23, 4  ;;  %s3014_s28 = int_to_ptr.vmem [resolvable:$false] %s3013_s28 }
  0x51   : > { %s3015_s10 = scalar_lea.vmem %s3014_s28, 256  ;;  %p3016_p9 = scmp.lt.s32.totalorder %s3255_s27, %s3014_s28 }
  0x52   : > { %p3011_p3 = pnand %p3009_p1, %p2997_p7  ;;  %p3017_p2 = scmp.lt.s32.totalorder %s3015_s10, %s3008_s12 }
  0x54   : > { %p3012_p6 = pneg %p3011_p3  ;;  %p3018_p4 = por %p3017_p2, %p3016_p9 }
  0x56   : > { %p3019_p8 = pnand %p3018_p4, %p3012_p6 }
  0x58   : > { %3022 = shalt.err (!%p3019_p8)
}
  0x59   : > { %s3491_s9 = smov 64   ;;  %p3492_p7 = scmp.ne.s32.totalorder %s3486_s26, 0 }
  0x5a   : > { %2594 = dma.hbm_to_vmem [thread:$0]  (!%p3251_p11), %s3249_s17, 128, %s3255_s27, %s3257_s7, %s3491_s9, %s3491_s9, %s3105_s30  }
  0x5b   : > { %242 = sbr.rel (%p3492_p7) target bundleno = 1547 (0x60b), region = 40  ;;  %s3284_s13 = sand.u32 (!%p3492_p7), 1, %s3087_s19  }
  0x5c   : > { %s2218_s28 = sshll.u32 (!%p3492_p7), %s3284_s13, 3  ;;  %s245_s14 = scalar_lea.sflag (!%p3492_p7), [#allocation4], %s3284_s13 }
  0x5d   : > { %s3290_s6 = scalar_lea.vmem (!%p3492_p7), [#allocation3], %s2218_s28  ;;  %p3493_p4 = scmp.ne.s32.totalorder (!%p3492_p7), %s3484_s24, 0 }
  0x60   : > { %3066 = dma.done.wait (%p3493_p4), %s245_s14, 128  }
  0x61   : > { %3068 = vsyncadd (%p3493_p4), %s245_s14, 4294967168  ;;  %p3494_p8 = scmp.eq.s32.totalorder %s3164_s22, 0 }
  0x63   : > { %3070 = dma.done.wait (%p3494_p8), [#allocation7], 18528   ;;  %p3495_p2 = pmov %p3494_p8 }
  0x65   : > { %3072 = vsyncadd (%p3495_p2), [#allocation7], 4294948768  ;;  %p3496_p11 = pmov %p3495_p2 }
  0x66   : > { %p3497_p13 = pmov %p3495_p2 }
  0x67   : > { %3074 = dma.done.wait (%p3496_p11), [#allocation10], 3072  }
  0x68   : > { %3076 = vsyncadd (%p3497_p13), [#allocation10], 4294964224  ;;  %v3107_v0 = vmov 0   ;;  %v2653_v1 = vld [vmem:[#allocation6 + $0x74] ss:$8 sps:$4 sm:$0xff]   ;;  %v293_v11 = vlaneseq  ;;  %vm3109_vm4 = vmmov 0  }
  0x69   : > { %765 = vmatprep.mubr.bf16.mxu1 %v3107_v0  ;;  %v2655_v2 = vld [vmem:[#allocation6 + $0x70] ss:$8 sps:$4 sm:$0xff]   ;;  %690 = vmatprep.subr.bf16.mxu0 %v2653_v1  ;;  %v2656_v3 = vld [vmem:[#allocation6 + $0x64] ss:$8 sps:$4 sm:$0xff]   ;;  %v2658_v4 = vld [vmem:[#allocation6 + $0x60] ss:$8 sps:$4 sm:$0xff]  }
  0x6a   : > { %691 = vmatpush1.bf16.msra.mxu0 %v2655_v2  ;;  %v2659_v5 = vld [vmem:[#allocation6 + $0x54] ss:$8 sps:$4 sm:$0xff]   ;;  %v2661_v6 = vld [vmem:[#allocation6 + $0x50] ss:$8 sps:$4 sm:$0xff]   ;;  %v2662_v7 = vld [vmem:[#allocation6 + $0x44] ss:$8 sps:$4 sm:$0xff]  }
  0x6b   : > { %692 = vmatprep.subr.bf16.mxu0 %v2656_v3  ;;  %v2664_v8 = vld [vmem:[#allocation6 + $0x40] ss:$8 sps:$4 sm:$0xff]   ;;  %v2676_v9 = vld [vmem:[#allocation6 + $0x174] ss:$8 sps:$4 sm:$0xff]   ;;  %v2679_v10 = vld [vmem:[#allocation6 + $0x170] ss:$8 sps:$4 sm:$0xff]  }
  0x6c   : > { %v2665_v12 = vld [vmem:[#allocation6 + $0x34] ss:$8 sps:$4 sm:$0xff]   ;;  %733 = vmatprep.subr.bf16.mxu1 %v2676_v9  ;;  %v2682_v13 = vld [vmem:[#allocation6 + $0x164] ss:$8 sps:$4 sm:$0xff]   ;;  %v2685_v14 = vld [vmem:[#allocation6 + $0x160] ss:$8 sps:$4 sm:$0xff]  }
  0x6d   : > { %734 = vmatpush1.bf16.msra.mxu1 %v2679_v10  ;;  %v2667_v15 = vld [vmem:[#allocation6 + $0x30] ss:$8 sps:$4 sm:$0xff]   ;;  %v3305_v16 = vshrl.u32 %v293_v11, 7  ;;  %v2668_v17 = vld [vmem:[#allocation6 + $0x24] ss:$8 sps:$4 sm:$0xff]   ;;  %s2450_s15 = sshll.u32 %s3164_s22, 7 }
  0x6e   : > { %693 = vmatpush1.bf16.msra.mxu0 %v2658_v4  ;;  %735 = vmatprep.subr.bf16.mxu1 %v2682_v13  ;;  %v2688_v18 = vld [vmem:[#allocation6 + $0x154] ss:$8 sps:$4 sm:$0xff]   ;;  %v2691_v19 = vld [vmem:[#allocation6 + $0x150] ss:$8 sps:$4 sm:$0xff]   ;;  %v2670_v20 = vld [vmem:[#allocation6 + $0x20] ss:$8 sps:$4 sm:$0xff]   ;;  %s3428_s9 = scalar_lea.hbm %s3478_s5, %s2450_s15 }
  0x6f   : > { %694 = vmatprep.subr.bf16.mxu0 %v2659_v5  ;;  %v2694_v21 = vld [vmem:[#allocation6 + $0x144] ss:$8 sps:$4 sm:$0xff]   ;;  %v295_v22 = vadd.s32 8, %v3305_v16  ;;  %v2671_v23 = vld [vmem:[#allocation6 + $0x14] ss:$8 sps:$4 sm:$0xff]   ;;  %v3311_v30 = vand.u32 15, %v3305_v16 }
  0x70   : > { %v2673_v24 = vld [vmem:[#allocation6 + $0x10] ss:$8 sps:$4 sm:$0xff]   ;;  %v2697_v25 = vld [vmem:[#allocation6 + $0x140] ss:$8 sps:$4 sm:$0xff]   ;;  %v2700_v26 = vld [vmem:[#allocation6 + $0x134] ss:$8 sps:$4 sm:$0xff]  }
  0x71   : > { %736 = vmatpush1.bf16.msra.mxu1 %v2685_v14  ;;  %v3308_v27 = vand.u32 15, %v295_v22  ;;  %v2674_v28 = vld [vmem:[#allocation6 + $0x4] ss:$8 sps:$4 sm:$0xff]   ;;  %v2703_v29 = vld [vmem:[#allocation6 + $0x130] ss:$8 sps:$4 sm:$0xff]   ;;  %vm339_vm0 = vcmp.lt.s32.totalorder %v3305_v16, 7 }
  0x72   : > { %695 = vmatpush1.bf16.msra.mxu0 %v2661_v6  ;;  %737 = vmatprep.subr.bf16.mxu1 %v2688_v18  ;;  %v2678_v31 = vld [vmem:[#allocation6] ss:$8 sps:$4 sm:$0xff]   ;;  %v2706_v32 = vld [vmem:[#allocation6 + $0x124] ss:$8 sps:$4 sm:$0xff]   ;;  %v2680_v34 = vld [vmem:[#allocation6 + $0xf4] ss:$8 sps:$4 sm:$0xff]  }
  0x73   : > { %696 = vmatprep.subr.bf16.mxu0 %v2662_v7  ;;  %v334_v33 = vadd.s32 1, %v3308_v27  ;;  %v2684_v35 = vld [vmem:[#allocation6 + $0xf0] ss:$8 sps:$4 sm:$0xff]   ;;  %vm324_vm1 = vcmp.lt.s32.totalorder %v3305_v16, 1  ;;  %v2686_v36 = vld [vmem:[#allocation6 + $0xe4] ss:$8 sps:$4 sm:$0xff]  }
  0x74   : > { %v2709_v37 = vld [vmem:[#allocation6 + $0x120] ss:$8 sps:$4 sm:$0xff]   ;;  %vm320_vm2 = vcmp.ge.s32.totalorder %v3311_v30, 1  ;;  %v2712_v38 = vld [vmem:[#allocation6 + $0x114] ss:$8 sps:$4 sm:$0xff]   ;;  %v3108_v14 = vmov 0.0  }
  0x75   : > { %738 = vmatpush1.bf16.msra.mxu1 %v2691_v19  ;;  %v289_v39 = vld [vmem:[%s3290_s6] sm:$0xf]  ;;  %vm336_vm3 = vcmp.lt.s32.totalorder %v334_v33, 16  ;;  %v290_v41 = vld [vmem:[%s3290_s6 + $0x4] sm:$0xf]  ;;  %v2732_v18 = vld [vmem:[#allocation9 + $0x20] sm:$0xff]  }
  0x76   : > { %697 = vmatpush1.bf16.msra.mxu0 %v2664_v8  ;;  %739 = vmatprep.subr.bf16.mxu1 %v2694_v21  ;;  %v2715_v40 = vld [vmem:[#allocation6 + $0x110] ss:$8 sps:$4 sm:$0xff]   ;;  %v3319_v42 = vunpack.c.l.bf16 %v289_v39  ;;  %358 = vst [vmem:[#allocation2 + $0x4] sm:$0xf] %v289_v39  ;;  %v2690_v43 = vld [vmem:[#allocation6 + $0xe0] ss:$8 sps:$4 sm:$0xff]   ;;  %v3321_v45 = vunpack.c.l.bf16 %v290_v41 }
  0x77   : > { %698 = vmatprep.subr.bf16.mxu0 %v2665_v12  ;;  %v2718_v44 = vld [vmem:[#allocation6 + $0x104] ss:$8 sps:$4 sm:$0xff]   ;;  %359 = vst [vmem:[#allocation2 + $0x10] sm:$0xf] %v290_v41  ;;  %v2692_v46 = vld [vmem:[#allocation6 + $0xd4] ss:$8 sps:$4 sm:$0xff]  }
  0x78   : > { %v337_v47 = vrot.slane %v3319_v42, 1  ;;  %v322_v48 = vrot.slane %v3319_v42, 7  ;;  %v338_v49 = vrot.slane %v3321_v45, 1  ;;  %v323_v50 = vrot.slane %v3321_v45, 7  ;;  %v2721_v51 = vld [vmem:[#allocation6 + $0x100] ss:$8 sps:$4 sm:$0xff]  }
  0x79   : > { %740 = vmatpush1.bf16.msra.mxu1 %v2697_v25  ;;  %v2696_v52 = vld [vmem:[#allocation6 + $0xd0] ss:$8 sps:$4 sm:$0xff]   ;;  %v2698_v57 = vld [vmem:[#allocation6 + $0xc4] ss:$8 sps:$4 sm:$0xff]   ;;  %v2702_v1 = vld [vmem:[#allocation6 + $0xc0] ss:$8 sps:$4 sm:$0xff]  }
  0x7a   : > { %699 = vmatpush1.bf16.msra.mxu0 %v2667_v15  ;;  %741 = vmatprep.subr.bf16.mxu1 %v2700_v26  ;;  %v340_v53 = vsel %vm339_vm0, %v337_v47, %v338_v49  ;;  %v341_v54 = vsel %vm339_vm0, %v338_v49, %v337_v47  ;;  %v325_v55 = vsel %vm324_vm1, %v322_v48, %v323_v50  ;;  %v2704_v2 = vld [vmem:[#allocation6 + $0xb4] ss:$8 sps:$4 sm:$0xff]   ;;  %v2708_v3 = vld [vmem:[#allocation6 + $0xb0] ss:$8 sps:$4 sm:$0xff]   ;;  %v2710_v4 = vld [vmem:[#allocation6 + $0xa4] ss:$8 sps:$4 sm:$0xff]  }
  0x7b   : > { %700 = vmatprep.subr.bf16.mxu0 %v2668_v17  ;;  %v326_v56 = vsel %vm324_vm1, %v323_v50, %v322_v48  ;;  %v347_v58 = vsel %vm336_vm3, %v341_v54, 0.0  ;;  %v2434_v59 = vpack.c.bf16 %v340_v53, %v340_v53  ;;  %v2433_v61 = vpack.c.bf16 %v325_v55, %v325_v55  ;;  %v2714_v6 = vld [vmem:[#allocation6 + $0xa0] ss:$8 sps:$4 sm:$0xff]   ;;  %v2716_v8 = vld [vmem:[#allocation6 + $0x94] ss:$8 sps:$4 sm:$0xff]   ;;  %s286_s16 = scalar_lea.vmem [#allocation11], %s2218_s28 }
  0x7c   : > { %v331_v60 = vsel %vm320_vm2, %v326_v56, 0.0  ;;  %v2435_v62 = vpack.c.bf16 %v347_v58, %v347_v58  ;;  %v2720_v9 = vld [vmem:[#allocation6 + $0x90] ss:$8 sps:$4 sm:$0xff]   ;;  %v2722_v10 = vld [vmem:[#allocation6 + $0x84] ss:$8 sps:$4 sm:$0xff]   ;;  %v3349_v49 = vsub.s32 1, %v3305_v16 }
  0x7d   : > { %742 = vmatpush1.bf16.msra.mxu1 %v2703_v29  ;;  %v2432_v63 = vpack.c.bf16 %v331_v60, %v331_v60  ;;  %368 = vst [vmem:[#allocation2 + $0x8] sm:$0xf] %v2434_v59  ;;  %357 = vst [vmem:[#allocation2 + $0xc] sm:$0xf] %v2433_v61  ;;  %v2725_v11 = vld [vmem:[#allocation6 + $0x80] ss:$8 sps:$4 sm:$0xff]  }
  0x7e   : > { %701 = vmatpush1.bf16.msra.mxu0 %v2670_v20  ;;  %743 = vmatprep.subr.bf16.mxu1 %v2706_v32  ;;  %369 = vst [vmem:[#allocation2 + $0x14] sm:$0xf] %v2435_v62  ;;  %v2726_v7 = vld [vmem:[#allocation2 + $0x4] ss:$12 sps:$4 sm:$0xff]   ;;  %v2731_v17 = vld [vmem:[#allocation9 + $0x28] sm:$0xff]   ;;  %vm905_vm5 = vcmp.lt.s32.totalorder %v3305_v16, 2 }
  0x7f   : > { %702 = vmatprep.subr.bf16.mxu0 %v2671_v23  ;;  %356 = vst [vmem:[#allocation2] sm:$0xf] %v2432_v63  ;;  %722 = vmatprep.mubr.bf16.mxu0 %v2726_v7  ;;  %v2729_v13 = vld [vmem:[#allocation9 + $0x38] sm:$0xff]   ;;  %v2730_v15 = vld [vmem:[#allocation9 + $0x30] sm:$0xff]   ;;  %v2735_v21 = vld [vmem:[#allocation9 + $0x8] sm:$0xff]   ;;  %vm920_vm7 = vcmp.lt.s32.totalorder %v3305_v16, 6 }
  0x80   : > { %v2733_v19 = vld [vmem:[#allocation9 + $0x18] sm:$0xff]   ;;  %v2734_v20 = vld [vmem:[#allocation9 + $0x10] sm:$0xff]   ;;  %v2736_v22 = vld [vmem:[#allocation9] sm:$0xff]   ;;  %vm901_vm8 = vcmp.ge.s32.totalorder %v3311_v30, 2  ;;  %vm1494_vm9 = vcmp.ge.s32.totalorder %v3311_v30, 4  ;;  %vm1498_vm10 = vcmp.lt.s32.totalorder %v3305_v16, 4 }
  0x81   : > { %744 = vmatpush1.bf16.msra.mxu1 %v2709_v37  ;;  %v2737_v23 = vld [vmem:[#allocation6 + $0x1f0] ss:$8 sps:$4 sm:$0xff]   ;;  %v2742_v25 = vld [vmem:[#allocation6 + $0x1e4] ss:$8 sps:$4 sm:$0xff]   ;;  %v2740_v26 = vld [vmem:[#allocation6 + $0x1e0] ss:$8 sps:$4 sm:$0xff]  }
  0x82   : > { %703 = vmatpush1.bf16.msra.mxu0 %v2673_v24  ;;  %745 = vmatprep.subr.bf16.mxu1 %v2712_v38  ;;  %v2739_v24 = vld [vmem:[#allocation6 + $0x1f4] ss:$8 sps:$4 sm:$0xff]   ;;  %v2748_v32 = vld [vmem:[#allocation6 + $0x1c4] ss:$8 sps:$4 sm:$0xff]   ;;  %v2746_v33 = vld [vmem:[#allocation6 + $0x1c0] ss:$8 sps:$4 sm:$0xff]  }
  0x83   : > { %704 = vmatprep.subr.bf16.mxu0 %v2674_v28  ;;  %v2745_v28 = vld [vmem:[#allocation6 + $0x1d4] ss:$8 sps:$4 sm:$0xff]   ;;  %v2752_v37 = vld [vmem:[#allocation6 + $0x1a0] ss:$8 sps:$4 sm:$0xff]   ;;  %v2755_v39 = vld [vmem:[#allocation6 + $0x190] ss:$8 sps:$4 sm:$0xff]  }
  0x84   : > { %v2763_v29 = vld [vmem:[#allocation6 + $0x2f4] ss:$8 sps:$4 sm:$0xff]   ;;  %v2758_v41 = vld [vmem:[#allocation6 + $0x180] ss:$8 sps:$4 sm:$0xff]   ;;  %s2106_s12 = sshll.u32 %s286_s16, 4  ;;  %s2093_s22 = scalar_lea.sflag [#allocation5], %s3284_s13  ;;  %s3430_s12 = int_to_ptr.vmem [resolvable:$true] %s2106_s12 }
  0x85   : > { %746 = vmatpush1.bf16.msra.mxu1 %v2715_v40  ;;  %v2724_v5 = vld [vmem:[#allocation2 + $0x8] ss:$12 sps:$4 sm:$0xff]   ;;  %v2757_v38 = vld [vmem:[#allocation6 + $0x194] ss:$8 sps:$4 sm:$0xff]   ;;  %s3023_s28 = scalar_lea.vmem %s3430_s12, 128  ;;  %p3498_p0 = scmp.ne.s32.totalorder %s3489_s29, 0 }
  0x86   : > { %705 = vmatpush1.bf16.msra.mxu0 %v2678_v31  ;;  %747 = vmatprep.subr.bf16.mxu1 %v2718_v44  ;;  %v2728_v12 = vld [vmem:[#allocation2] ss:$12 sps:$4 sm:$0xff]   ;;  %v2770_v47 = vld [vmem:[#allocation6 + $0x260] ss:$8 sps:$4 sm:$0xff]   ;;  %p3024_p12 = scmp.ne.s32.totalorder %s3430_s12, %s3023_s28  ;;  %s3110_s14 = smov [#allocation11]  }
  0x87   : > { %706 = vmatprep.subr.bf16.mxu0 %v2680_v34  ;;  %v2743_v31 = vld [vmem:[#allocation6 + $0x1d0] ss:$8 sps:$4 sm:$0xff]   ;;  %v2751_v34 = vld [vmem:[#allocation6 + $0x1b4] ss:$8 sps:$4 sm:$0xff]   ;;  %v2760_v40 = vld [vmem:[#allocation6 + $0x184] ss:$8 sps:$4 sm:$0xff]  }
  0x88   : > { %v2764_v44 = vld [vmem:[#allocation6 + $0x270] ss:$8 sps:$4 sm:$0xff]   ;;  %p3025_p5 = pnand %p3024_p12, %p3498_p0  ;;  %s3027_s6 = sshll.u32 %s3110_s14, 4  ;;  %s3028_s6 = int_to_ptr.vmem [resolvable:$false] %s3027_s6 }
  0x89   : > { %748 = vmatpush1.bf16.msra.mxu1 %v2721_v51  ;;  %v422_v51 = vld [vmem:[#allocation8] sm:$0x3]  ;;  %s3029_s24 = scalar_lea.vmem %s3028_s6, 256  ;;  %p3030_p1 = scmp.lt.s32.totalorder %s3430_s12, %s3028_s6 }
  0x8a   : > { %707 = vmatpush2.bf16.msra.mxu0 %v2684_v35  ;;  %2505 = vmatprep.subr.bf16.mxu1 %v3108_v14  ;;  %v2749_v35 = vld [vmem:[#allocation6 + $0x1b0] ss:$8 sps:$4 sm:$0xff]   ;;  %v431_v53 = vrot.slane %v422_v51, %v3349_v49  ;;  %p3026_p10 = pneg %p3025_p5  ;;  %p3031_p3 = scmp.lt.s32.totalorder %s3029_s24, %s3023_s28 }
  0x8b   : > { %708 = vmatprep.subr.bf16.mxu0 %v2686_v36  ;;  %v2754_v36 = vld [vmem:[#allocation6 + $0x1a4] ss:$8 sps:$4 sm:$0xff]  }
  0x8c   : > { %766 = vmatmul.mubr.bf16.vlgmr.msra.gmra.mxu1 %v2724_v5  ;;  %p3032_p6 = por %p3031_p3, %p3030_p1 }
  0x8d   : > { %2506 = vmatpush3.bf16.msra.mxu1 %v2729_v13  ;;  %2521 = vmatprep.mubr.msk.bf16.mxu1 %vm3109_vm4, %v3108_v14 }
  0x8e   : > { %709 = vmatpush2.bf16.msra.mxu0 %v2690_v43  ;;  %2507 = vmatprep.subr.bf16.mxu1 %v3108_v14  ;;  %v2766_v43 = vld [vmem:[#allocation6 + $0x274] ss:$8 sps:$4 sm:$0xff]   ;;  %p3033_p9 = pnand %p3032_p6, %p3026_p10 }
  0x8f   : > { %710 = vmatprep.subr.bf16.mxu0 %v2692_v46  ;;  %v2772_v46 = vld [vmem:[#allocation6 + $0x264] ss:$8 sps:$4 sm:$0xff]  }
  0x91   : > { %2508 = vmatpush3.bf16.msra.mxu1 %v2730_v15  ;;  %v2761_v15 = vld [vmem:[#allocation6 + $0x2f0] ss:$8 sps:$4 sm:$0xff]  }
  0x92   : > { %711 = vmatpush2.bf16.msra.mxu0 %v2696_v52  ;;  %2509 = vmatprep.subr.bf16.mxu1 %v3108_v14 }
  0x93   : > { %712 = vmatprep.subr.bf16.mxu0 %v2698_v57 }
  0x95   : > { %2510 = vmatpush3.bf16.msra.mxu1 %v2731_v17 }
  0x96   : > { %713 = vmatpush2.bf16.msra.mxu0 %v2702_v1  ;;  %2511 = vmatprep.subr.bf16.mxu1 %v3108_v14 }
  0x97   : > { %714 = vmatprep.subr.bf16.mxu0 %v2704_v2  ;;  %v3353_v2 = vsub.s32 0, %v3305_v16 }
  0x99   : > { %2512 = vmatpush3.bf16.msra.mxu1 %v2732_v18  ;;  %v2769_v18 = vld [vmem:[#allocation6 + $0x2e4] ss:$8 sps:$4 sm:$0xff]  }
  0x9a   : > { %715 = vmatpush2.bf16.msra.mxu0 %v2708_v3  ;;  %2513 = vmatprep.subr.bf16.mxu1 %v3108_v14  ;;  %v427_v3 = vrot.slane %v422_v51, %v3353_v2 }
  0x9b   : > { %716 = vmatprep.subr.bf16.mxu0 %v2710_v4 }
  0x9d   : > { %2514 = vmatpush3.bf16.msra.mxu1 %v2733_v19  ;;  %v2767_v19 = vld [vmem:[#allocation6 + $0x2e0] ss:$8 sps:$4 sm:$0xff]  }
  0x9e   : > { %717 = vmatpush2.bf16.msra.mxu0 %v2714_v6  ;;  %2515 = vmatprep.subr.bf16.mxu1 %v3108_v14 }
  0x9f   : > { %718 = vmatprep.subr.bf16.mxu0 %v2716_v8 }
  0xa1   : > { %2516 = vmatpush3.bf16.msra.mxu1 %v2734_v20  ;;  %v2775_v20 = vld [vmem:[#allocation6 + $0x2d4] ss:$8 sps:$4 sm:$0xff]  }
  0xa2   : > { %719 = vmatpush2.bf16.msra.mxu0 %v2720_v9  ;;  %2517 = vmatprep.subr.bf16.mxu1 %v3108_v14 }
  0xa3   : > { %720 = vmatprep.subr.bf16.mxu0 %v2722_v10 }
  0xa5   : > { %2518 = vmatpush3.bf16.msra.mxu1 %v2735_v21  ;;  %v2773_v21 = vld [vmem:[#allocation6 + $0x2d0] ss:$8 sps:$4 sm:$0xff]  }
  0xa6   : > { %721 = vmatpush2.bf16.msra.mxu0 %v2725_v11  ;;  %2519 = vmatprep.subr.bf16.mxu1 %v3108_v14 }
  0xa7   : > { %1281 = vmatprep.subr.bf16.mxu0 %v2739_v24  ;;  %v2781_v24 = vld [vmem:[#allocation6 + $0x2c4] ss:$8 sps:$4 sm:$0xff]  }
  0xa9   : > { %723 = vmatmul.mubr.bf16.vlgmr.msra.gmra.mxu0 %v2728_v12  ;;  %2520 = vmatpush3.bf16.msra.mxu1 %v2736_v22  ;;  %v2778_v22 = vld [vmem:[#allocation6 + $0x254] ss:$8 sps:$4 sm:$0xff]  }
  0xaa   : > { %1282 = vmatpush1.bf16.msra.mxu0 %v2737_v23  ;;  %1324 = vmatprep.subr.bf16.mxu1 %v2763_v29  ;;  %v2776_v23 = vld [vmem:[#allocation6 + $0x250] ss:$8 sps:$4 sm:$0xff]   ;;  %v2787_v29 = vld [vmem:[#allocation6 + $0x2b4] ss:$8 sps:$4 sm:$0xff]  }
  0xab   : > { %1283 = vmatprep.subr.bf16.mxu0 %v2742_v25  ;;  %v2779_v25 = vld [vmem:[#allocation6 + $0x2c0] ss:$8 sps:$4 sm:$0xff]  }
  0xae   : > { %1284 = vmatpush1.bf16.msra.mxu0 %v2740_v26  ;;  %v2784_v26 = vld [vmem:[#allocation6 + $0x244] ss:$8 sps:$4 sm:$0xff]  }
  0xaf   : > { %1285 = vmatprep.subr.bf16.mxu0 %v2745_v28  ;;  %v2782_v28 = vld [vmem:[#allocation6 + $0x240] ss:$8 sps:$4 sm:$0xff]  }
  0xb2   : > { %1286 = vmatpush1.bf16.msra.mxu0 %v2743_v31  ;;  %v2785_v31 = vld [vmem:[#allocation6 + $0x2b0] ss:$8 sps:$4 sm:$0xff]  }
  0xb3   : > { %1287 = vmatprep.subr.bf16.mxu0 %v2748_v32  ;;  %v2790_v32 = vld [vmem:[#allocation6 + $0x234] ss:$8 sps:$4 sm:$0xff]  }
  0xb6   : > { %1288 = vmatpush1.bf16.msra.mxu0 %v2746_v33  ;;  %v2788_v33 = vld [vmem:[#allocation6 + $0x230] ss:$8 sps:$4 sm:$0xff]  }
  0xb7   : > { %1289 = vmatprep.subr.bf16.mxu0 %v2751_v34  ;;  %v2793_v34 = vld [vmem:[#allocation6 + $0x2a4] ss:$8 sps:$4 sm:$0xff]  }
  0xba   : > { %1290 = vmatpush1.bf16.msra.mxu0 %v2749_v35  ;;  %v2791_v35 = vld [vmem:[#allocation6 + $0x2a0] ss:$8 sps:$4 sm:$0xff]  }
  0xbb   : > { %1291 = vmatprep.subr.bf16.mxu0 %v2754_v36  ;;  %v2796_v36 = vld [vmem:[#allocation6 + $0x224] ss:$8 sps:$4 sm:$0xff]  }
  0xbe   : > { %1292 = vmatpush1.bf16.msra.mxu0 %v2752_v37  ;;  %v2794_v37 = vld [vmem:[#allocation6 + $0x220] ss:$8 sps:$4 sm:$0xff]  }
  0xbf   : > { %1293 = vmatprep.subr.bf16.mxu0 %v2757_v38  ;;  %v2799_v38 = vld [vmem:[#allocation6 + $0x294] ss:$8 sps:$4 sm:$0xff]  }
  0xc2   : > { %1294 = vmatpush1.bf16.msra.mxu0 %v2755_v39  ;;  %v2797_v39 = vld [vmem:[#allocation6 + $0x290] ss:$8 sps:$4 sm:$0xff]  }
  0xc3   : > { %1295 = vmatprep.subr.bf16.mxu0 %v2760_v40  ;;  %v2800_v40 = vld [vmem:[#allocation6 + $0x210] ss:$8 sps:$4 sm:$0xff]  }
  0xc6   : > { %1296 = vmatpush1.bf16.msra.mxu0 %v2758_v41  ;;  %v2802_v41 = vld [vmem:[#allocation6 + $0x214] ss:$8 sps:$4 sm:$0xff]  }
  0xc7   : > { %1297 = vmatprep.subr.bf16.mxu0 %v2766_v43  ;;  %v2805_v43 = vld [vmem:[#allocation6 + $0x284] ss:$8 sps:$4 sm:$0xff]  }
  0xca   : > { %1298 = vmatpush2.bf16.msra.mxu0 %v2764_v44  ;;  %v2803_v44 = vld [vmem:[#allocation6 + $0x280] ss:$8 sps:$4 sm:$0xff]  }
  0xcb   : > { %1299 = vmatprep.subr.bf16.mxu0 %v2772_v46  ;;  %v2808_v46 = vld [vmem:[#allocation6 + $0x204] ss:$8 sps:$4 sm:$0xff]  }
  0xce   : > { %1300 = vmatpush2.bf16.msra.mxu0 %v2770_v47  ;;  %v2806_v47 = vld [vmem:[#allocation6 + $0x200] ss:$8 sps:$4 sm:$0xff]  }
  0xcf   : > { %1301 = vmatprep.subr.bf16.mxu0 %v2778_v22  ;;  %v2817_v22 = vld [vmem:[#allocation9 + $0x40] sm:$0xff]  }
  0xd2   : > { %1302 = vmatpush2.bf16.msra.mxu0 %v2776_v23  ;;  %v2818_v23 = vld [vmem:[#allocation6 + $0x370] ss:$8 sps:$4 sm:$0xff]  }
  0xd3   : > { %1303 = vmatprep.subr.bf16.mxu0 %v2784_v26  ;;  %v2821_v26 = vld [vmem:[#allocation6 + $0x360] ss:$8 sps:$4 sm:$0xff]  }
  0xd6   : > { %1304 = vmatpush2.bf16.msra.mxu0 %v2782_v28  ;;  %v2826_v28 = vld [vmem:[#allocation6 + $0x354] ss:$8 sps:$4 sm:$0xff]  }
  0xd7   : > { %1305 = vmatprep.subr.bf16.mxu0 %v2790_v32  ;;  %v2829_v32 = vld [vmem:[#allocation6 + $0x344] ss:$8 sps:$4 sm:$0xff]  }
  0xda   : > { %1306 = vmatpush2.bf16.msra.mxu0 %v2788_v33  ;;  %v2827_v33 = vld [vmem:[#allocation6 + $0x340] ss:$8 sps:$4 sm:$0xff]  }
  0xdb   : > { %1307 = vmatprep.subr.bf16.mxu0 %v2796_v36  ;;  %v2835_v36 = vld [vmem:[#allocation6 + $0x324] ss:$8 sps:$4 sm:$0xff]  }
  0xde   : > { %1308 = vmatpush2.bf16.msra.mxu0 %v2794_v37  ;;  %v2833_v37 = vld [vmem:[#allocation6 + $0x320] ss:$8 sps:$4 sm:$0xff]  }
  0xdf   : > { %1309 = vmatprep.subr.bf16.mxu0 %v2802_v41  ;;  %v2839_v41 = vld [vmem:[#allocation6 + $0x300] ss:$8 sps:$4 sm:$0xff]  }
  0xe2   : > { %1310 = vmatpush2.bf16.msra.mxu0 %v2800_v40  ;;  %v2841_v40 = vld [vmem:[#allocation6 + $0x304] ss:$8 sps:$4 sm:$0xff]  }
  0xe3   : > { %1311 = vmatprep.subr.bf16.mxu0 %v2808_v46  ;;  %v2853_v46 = vld [vmem:[#allocation6 + $0x3e4] ss:$8 sps:$4 sm:$0xff]  }
  0xe6   : > { %1312 = vmatpush2.bf16.msra.mxu0 %v2806_v47  ;;  %v2851_v47 = vld [vmem:[#allocation6 + $0x3e0] ss:$8 sps:$4 sm:$0xff]  }
 0x14c   : > { %v767_v48 = vpop.f32.mrf.mxu1 }
 0x14e   : > { %v769_v50 = vpop.f32.mrf.mxu1 }
 0x150   : > { %v771_v55 = vpop.f32.mrf.mxu1 }
 0x152   : > { %v773_v60 = vpop.f32.mrf.mxu1 }
 0x169   : > { %v724_v52 = vpop.f32.mrf.mxu0 }
 0x16a   : > { %v725_v5 = vadd.f32 %v724_v52, %v427_v3  ;;  %v915_v52 = vadd.s32 2, %v3308_v27 }
 0x16b   : > { %v726_v54 = vpop.f32.mrf.mxu0 }
 0x16c   : > { %v727_v57 = vadd.f32 %v726_v54, %v431_v53  ;;  %v768_v7 = vadd.f32 %v767_v48, %v725_v5  ;;  %v2279_v48 = vld [vmem:[%s3477_s4] ss:$0 sm:$0xff]  ;;  %vm917_vm6 = vcmp.lt.s32.totalorder %v915_v52, 16 }
 0x16d   : > { %v728_v56 = vpop.f32.mrf.mxu0 }
 0x16e   : > { %v770_v61 = vadd.f32 %v769_v50, %v727_v57  ;;  %v729_v4 = vadd.f32 %v728_v56, %v427_v3 }
 0x16f   : > { %v730_v58 = vpop.f32.mrf.mxu0 }
 0x170   : > { %v731_v59 = vadd.f32 %v730_v58, %v431_v53  ;;  %v772_v6 = vadd.f32 %v771_v55, %v729_v4 }
 0x172   : > { %v774_v62 = vadd.f32 %v773_v60, %v731_v59  ;;  %v776_v9 = vpack.c.bf16 %v772_v6, %v768_v7 }
 0x174   : > { %v778_v63 = vpack.c.bf16 %v774_v62, %v770_v61 }
 0x176   : > { %v2278_v1 = vmul.bf16 3216621497, %v778_v63 }
 0x178   : > { %2899 = vpow.bf16 %v2278_v1 }
 0x186   : > { %v2900_v8 = vpop.eup %2899 }
 0x187   : > { %v783_v10 = vadd.bf16 1065369472, %v2900_v8 }
 0x189   : > { %2901 = vrcp.bf16 %v783_v10 }
 0x18a   : > { %2903 = vtanh.bf16 %v776_v9 }
 0x197   : > { %v2902_v11 = vpop.eup %2901 }
 0x198   : > { %v785_v12 = vmul.bf16 1065369472, %v2902_v11  ;;  %v2904_v13 = vpop.eup %2903 }
 0x19a   : > { %v786_v17 = vmul.bf16 %v2904_v13, %v785_v12  ;;  %v2810_v13 = vld [vmem:[#allocation9 + $0x78] sm:$0xff]  }
 0x19c   : > { %2522 = vmatmul.mubr.bf16.vlgmr.msra.gmra.mxu1 %v786_v17  ;;  %v2812_v17 = vld [vmem:[#allocation9 + $0x68] sm:$0xff]  }
 0x19d   : > { %1325 = vmatpush1.bf16.msra.mxu1 %v2761_v15  ;;  %1356 = vmatprep.mubr.bf16.mxu1 %v3107_v0  ;;  %v2811_v15 = vld [vmem:[#allocation9 + $0x70] sm:$0xff]  }
 0x19e   : > { %1326 = vmatprep.subr.bf16.mxu1 %v2769_v18  ;;  %v2813_v18 = vld [vmem:[#allocation9 + $0x60] sm:$0xff]  }
 0x1a1   : > { %1327 = vmatpush1.bf16.msra.mxu1 %v2767_v19  ;;  %v2814_v19 = vld [vmem:[#allocation9 + $0x58] sm:$0xff]  }
 0x1a2   : > { %1328 = vmatprep.subr.bf16.mxu1 %v2775_v20  ;;  %v2815_v20 = vld [vmem:[#allocation9 + $0x50] sm:$0xff]  }
 0x1a5   : > { %1329 = vmatpush1.bf16.msra.mxu1 %v2773_v21  ;;  %v2816_v21 = vld [vmem:[#allocation9 + $0x48] sm:$0xff]  }
 0x1a6   : > { %1330 = vmatprep.subr.bf16.mxu1 %v2781_v24  ;;  %v2820_v24 = vld [vmem:[#allocation6 + $0x374] ss:$8 sps:$4 sm:$0xff]  }
 0x1a7   : > { %1869 = vmatprep.subr.bf16.mxu0 %v2820_v24  ;;  %v2859_v24 = vld [vmem:[#allocation6 + $0x3d4] ss:$8 sps:$4 sm:$0xff]  }
 0x1a9   : > { %1331 = vmatpush1.bf16.msra.mxu1 %v2779_v25  ;;  %v2823_v25 = vld [vmem:[#allocation6 + $0x364] ss:$8 sps:$4 sm:$0xff]  }
 0x1aa   : > { %1332 = vmatprep.subr.bf16.mxu1 %v2787_v29  ;;  %v2844_v29 = vld [vmem:[#allocation6 + $0x474] ss:$8 sps:$4 sm:$0xff]  }
 0x1ad   : > { %1333 = vmatpush1.bf16.msra.mxu1 %v2785_v31  ;;  %v2824_v31 = vld [vmem:[#allocation6 + $0x350] ss:$8 sps:$4 sm:$0xff]  }
 0x1ae   : > { %1334 = vmatprep.subr.bf16.mxu1 %v2793_v34  ;;  %v2832_v34 = vld [vmem:[#allocation6 + $0x334] ss:$8 sps:$4 sm:$0xff]  }
 0x1b1   : > { %1335 = vmatpush1.bf16.msra.mxu1 %v2791_v35  ;;  %v2830_v35 = vld [vmem:[#allocation6 + $0x330] ss:$8 sps:$4 sm:$0xff]  }
 0x1b2   : > { %1336 = vmatprep.subr.bf16.mxu1 %v2799_v38  ;;  %v2838_v38 = vld [vmem:[#allocation6 + $0x314] ss:$8 sps:$4 sm:$0xff]  }
 0x1b5   : > { %1337 = vmatpush1.bf16.msra.mxu1 %v2797_v39  ;;  %v2836_v39 = vld [vmem:[#allocation6 + $0x310] ss:$8 sps:$4 sm:$0xff]  }
 0x1b6   : > { %1338 = vmatprep.subr.bf16.mxu1 %v2805_v43  ;;  %v2847_v43 = vld [vmem:[#allocation6 + $0x3f4] ss:$8 sps:$4 sm:$0xff]  }
 0x1b9   : > { %1339 = vmatpush1.bf16.msra.mxu1 %v2803_v44  ;;  %v2845_v44 = vld [vmem:[#allocation6 + $0x3f0] ss:$8 sps:$4 sm:$0xff]  }
 0x1ba   : > { %2525 = vmatprep.subr.bf16.mxu1 %v3108_v14 }
 0x25c   : > { %v892_v50 = vpop.f32.mrf.mxu1 }
 0x25d   : > { %v3362_v53 = vadd.f32 %v2279_v48, %v892_v50  ;;  %v1013_v50 = vld [vmem:[#allocation8 + $0x2] sm:$0x3] }
 0x25e   : > { %v2523_v51 = vpop.f32.mrf.mxu1 }
 0x25f   : > { %v903_v57 = vrot.slane %v3362_v53, 6  ;;  %v918_v58 = vrot.slane %v3362_v53, 2 }
 0x260   : > { %v895_v54 = vpop.f32.mrf.mxu1 }
 0x261   : > { %v3364_v55 = vadd.f32 %v2279_v48, %v895_v54  ;;  %v1022_v54 = vrot.slane %v1013_v50, %v3349_v49 }
 0x262   : > { %v2524_v56 = vpop.f32.mrf.mxu1 }
 0x263   : > { %v904_v59 = vrot.slane %v3364_v55, 6  ;;  %v919_v60 = vrot.slane %v3364_v55, 2 }
 0x265   : > { %v906_v61 = vsel %vm905_vm5, %v903_v57, %v904_v59  ;;  %v921_v62 = vsel %vm920_vm7, %v918_v58, %v919_v60  ;;  %v922_v63 = vsel %vm920_vm7, %v919_v60, %v918_v58  ;;  %v907_v6 = vsel %vm905_vm5, %v904_v59, %v903_v57 }
 0x266   : > { %v928_v1 = vsel %vm917_vm6, %v922_v63, 0.0  ;;  %v2437_v3 = vpack.c.bf16 %v906_v61, %v906_v61  ;;  %v2440_v4 = vpack.c.bf16 %v921_v62, %v921_v62  ;;  %v912_v7 = vsel %vm901_vm8, %v907_v6, 0.0 }
 0x267   : > { %v2459_v5 = vpack.c.bf16 %v928_v1, %v3364_v55  ;;  %v2454_v8 = vpack.c.bf16 %v3362_v53, %v912_v7 }
 0x268   : > { %938 = vst [vmem:[#allocation2 + $0xc] sm:$0xf] %v2437_v3  ;;  %957 = vst [vmem:[#allocation2 + $0x8] sm:$0xf] %v2440_v4 }
 0x269   : > { %2476 = vst [vmem:[#allocation2 + $0x10] sm:$0xff] %v2459_v5   ;;  %v1018_v5 = vrot.slane %v1013_v50, %v3353_v2  ;;  %v2347_v50 = vld [vmem:[%s3477_s4 + $0x1] ss:$0 sm:$0xff] }
 0x270   : > { %v961_v9 = vld [vmem:[#allocation2 + $0xc] sm:$0xff]  ;;  %v2809_v10 = vld [vmem:[#allocation2 + $0x8] ss:$12 sps:$4 sm:$0xff]  }
 0x271   : > { %v2295_v11 = vcombine.high %v2454_v8, %v961_v9  ;;  %v2294_v12 = vcombine.low %v2454_v8, %v961_v9  ;;  %1357 = vmatmul.mubr.bf16.vlgmr.msra.gmra.mxu1 %v2809_v10 }
 0x272   : > { %2541 = vmatprep.mubr.msk.bf16.mxu1 %vm3109_vm4, %v3108_v14  ;;  %2526 = vmatpush3.bf16.msra.mxu1 %v2810_v13 }
 0x273   : > { %1313 = vmatprep.mubr.bf16.mxu0 %v2295_v11  ;;  %2527 = vmatprep.subr.bf16.mxu1 %v3108_v14 }
 0x274   : > { %1314 = vmatmul.mubr.bf16.vlgmr.msra.gmra.mxu0 %v2294_v12 }
 0x275   : > { %1870 = vmatpush1.bf16.msra.mxu0 %v2818_v23  ;;  %v2854_v23 = vld [vmem:[#allocation6 + $0x450] ss:$8 sps:$4 sm:$0xff]  }
 0x276   : > { %2528 = vmatpush3.bf16.msra.mxu1 %v2811_v15  ;;  %1871 = vmatprep.subr.bf16.mxu0 %v2823_v25  ;;  %v2857_v25 = vld [vmem:[#allocation6 + $0x3d0] ss:$8 sps:$4 sm:$0xff]  }
 0x277   : > { %2529 = vmatprep.subr.bf16.mxu1 %v3108_v14 }
 0x279   : > { %1872 = vmatpush1.bf16.msra.mxu0 %v2821_v26  ;;  %v2862_v26 = vld [vmem:[#allocation6 + $0x444] ss:$8 sps:$4 sm:$0xff]  }
 0x27a   : > { %2530 = vmatpush3.bf16.msra.mxu1 %v2812_v17  ;;  %1873 = vmatprep.subr.bf16.mxu0 %v2826_v28  ;;  %v2860_v28 = vld [vmem:[#allocation6 + $0x440] ss:$8 sps:$4 sm:$0xff]  }
 0x27b   : > { %2531 = vmatprep.subr.bf16.mxu1 %v3108_v14 }
 0x27d   : > { %1874 = vmatpush1.bf16.msra.mxu0 %v2824_v31  ;;  %v2863_v31 = vld [vmem:[#allocation6 + $0x3c0] ss:$8 sps:$4 sm:$0xff]  }
 0x27e   : > { %2532 = vmatpush3.bf16.msra.mxu1 %v2813_v18  ;;  %1875 = vmatprep.subr.bf16.mxu0 %v2829_v32  ;;  %v2842_v18 = vld [vmem:[#allocation6 + $0x470] ss:$8 sps:$4 sm:$0xff]   ;;  %v2868_v32 = vld [vmem:[#allocation6 + $0x434] ss:$8 sps:$4 sm:$0xff]  }
 0x27f   : > { %2533 = vmatprep.subr.bf16.mxu1 %v3108_v14 }
 0x281   : > { %1876 = vmatpush1.bf16.msra.mxu0 %v2827_v33  ;;  %v2871_v33 = vld [vmem:[#allocation6 + $0x3b4] ss:$8 sps:$4 sm:$0xff]  }
 0x282   : > { %2534 = vmatpush3.bf16.msra.mxu1 %v2814_v19  ;;  %1877 = vmatprep.subr.bf16.mxu0 %v2832_v34  ;;  %v2869_v34 = vld [vmem:[#allocation6 + $0x3b0] ss:$8 sps:$4 sm:$0xff]  }
 0x283   : > { %2535 = vmatprep.subr.bf16.mxu1 %v3108_v14 }
 0x285   : > { %1878 = vmatpush1.bf16.msra.mxu0 %v2830_v35  ;;  %v2874_v35 = vld [vmem:[#allocation6 + $0x424] ss:$8 sps:$4 sm:$0xff]  }
 0x286   : > { %2536 = vmatpush3.bf16.msra.mxu1 %v2815_v20  ;;  %1879 = vmatprep.subr.bf16.mxu0 %v2835_v36  ;;  %v2850_v20 = vld [vmem:[#allocation6 + $0x464] ss:$8 sps:$4 sm:$0xff]   ;;  %v2872_v36 = vld [vmem:[#allocation6 + $0x420] ss:$8 sps:$4 sm:$0xff]  }
 0x287   : > { %2537 = vmatprep.subr.bf16.mxu1 %v3108_v14 }
 0x289   : > { %1880 = vmatpush1.bf16.msra.mxu0 %v2833_v37  ;;  %v2877_v37 = vld [vmem:[#allocation6 + $0x3a4] ss:$8 sps:$4 sm:$0xff]  }
 0x28a   : > { %2538 = vmatpush3.bf16.msra.mxu1 %v2816_v21  ;;  %1881 = vmatprep.subr.bf16.mxu0 %v2838_v38  ;;  %v2848_v21 = vld [vmem:[#allocation6 + $0x460] ss:$8 sps:$4 sm:$0xff]  }
 0x28b   : > { %2539 = vmatprep.subr.bf16.mxu1 %v3108_v14  ;;  %v2875_v38 = vld [vmem:[#allocation6 + $0x3a0] ss:$8 sps:$4 sm:$0xff]  }
 0x28d   : > { %1882 = vmatpush1.bf16.msra.mxu0 %v2836_v39  ;;  %v2880_v39 = vld [vmem:[#allocation6 + $0x414] ss:$8 sps:$4 sm:$0xff]  }
 0x28e   : > { %2540 = vmatpush3.bf16.msra.mxu1 %v2817_v22  ;;  %1883 = vmatprep.subr.bf16.mxu0 %v2841_v40  ;;  %v2856_v22 = vld [vmem:[#allocation6 + $0x454] ss:$8 sps:$4 sm:$0xff]   ;;  %v2878_v40 = vld [vmem:[#allocation6 + $0x410] ss:$8 sps:$4 sm:$0xff]  }
 0x28f   : > { %1912 = vmatprep.subr.bf16.mxu1 %v2844_v29  ;;  %v2865_v29 = vld [vmem:[#allocation6 + $0x3c4] ss:$8 sps:$4 sm:$0xff]  }
 0x291   : > { %1884 = vmatpush1.bf16.msra.mxu0 %v2839_v41  ;;  %v2881_v41 = vld [vmem:[#allocation6 + $0x390] ss:$8 sps:$4 sm:$0xff]  }
 0x292   : > { %1885 = vmatprep.subr.bf16.mxu0 %v2847_v43  ;;  %v2883_v43 = vld [vmem:[#allocation6 + $0x394] ss:$8 sps:$4 sm:$0xff]  }
 0x295   : > { %1886 = vmatpush2.bf16.msra.mxu0 %v2845_v44  ;;  %v2886_v44 = vld [vmem:[#allocation6 + $0x404] ss:$8 sps:$4 sm:$0xff]  }
 0x296   : > { %1887 = vmatprep.subr.bf16.mxu0 %v2853_v46  ;;  %v2884_v46 = vld [vmem:[#allocation6 + $0x400] ss:$8 sps:$4 sm:$0xff]  }
 0x299   : > { %1888 = vmatpush2.bf16.msra.mxu0 %v2851_v47  ;;  %v2889_v47 = vld [vmem:[#allocation6 + $0x384] ss:$8 sps:$4 sm:$0xff]  }
 0x29a   : > { %1889 = vmatprep.subr.bf16.mxu0 %v2859_v24 }
 0x29d   : > { %1890 = vmatpush2.bf16.msra.mxu0 %v2857_v25 }
 0x29e   : > { %1891 = vmatprep.subr.bf16.mxu0 %v2865_v29 }
 0x2a1   : > { %1892 = vmatpush2.bf16.msra.mxu0 %v2863_v31 }
 0x2a2   : > { %1893 = vmatprep.subr.bf16.mxu0 %v2871_v33 }
 0x2a5   : > { %1894 = vmatpush2.bf16.msra.mxu0 %v2869_v34 }
 0x2a6   : > { %1895 = vmatprep.subr.bf16.mxu0 %v2877_v37 }
 0x2a9   : > { %1896 = vmatpush2.bf16.msra.mxu0 %v2875_v38 }
 0x2aa   : > { %1897 = vmatprep.subr.bf16.mxu0 %v2883_v43 }
 0x2ad   : > { %1898 = vmatpush2.bf16.msra.mxu0 %v2881_v41 }
 0x2ae   : > { %1899 = vmatprep.subr.bf16.mxu0 %v2889_v47 }
 0x331   : > { %v1358_v48 = vpop.f32.mrf.mxu1 }
 0x333   : > { %v1360_v52 = vpop.f32.mrf.mxu1 }
 0x334   : > { %v1315_v51 = vpop.f32.mrf.mxu0 }
 0x335   : > { %v1362_v57 = vpop.f32.mrf.mxu1  ;;  %v1316_v7 = vadd.f32 %v1315_v51, %v1018_v5 }
 0x336   : > { %v1317_v56 = vpop.f32.mrf.mxu0 }
 0x337   : > { %v1318_v59 = vadd.f32 %v1317_v56, %v1022_v54  ;;  %v1364_v62 = vpop.f32.mrf.mxu1  ;;  %v1359_v9 = vadd.f32 %v1358_v48, %v1316_v7  ;;  %v2887_v48 = vld [vmem:[#allocation6 + $0x380] ss:$8 sps:$4 sm:$0xff]  }
 0x338   : > { %v1319_v58 = vpop.f32.mrf.mxu0  ;;  %1900 = vmatpush2.bf16.msra.mxu0 %v2887_v48 }
 0x339   : > { %v1361_v63 = vadd.f32 %v1360_v52, %v1318_v59  ;;  %v1320_v6 = vadd.f32 %v1319_v58, %v1018_v5 }
 0x33a   : > { %v1321_v60 = vpop.f32.mrf.mxu0 }
 0x33b   : > { %v1322_v61 = vadd.f32 %v1321_v60, %v1022_v54  ;;  %v1363_v8 = vadd.f32 %v1362_v57, %v1320_v6  ;;  %v899_v54 = vadd.f32 %v3362_v53, %v3319_v42  ;;  %v1508_v57 = vadd.s32 4, %v3308_v27 }
 0x33d   : > { %v1365_v1 = vadd.f32 %v1364_v62, %v1322_v61  ;;  %v1367_v11 = vpack.c.bf16 %v1363_v8, %v1359_v9  ;;  %v900_v61 = vadd.f32 %v3364_v55, %v3321_v45  ;;  %vm1510_vm11 = vcmp.lt.s32.totalorder %v1508_v57, 16  ;;  %v2891_v8 = vld [vmem:[#allocation9 + $0xb8] sm:$0xff]   ;;  %v2892_v9 = vld [vmem:[#allocation9 + $0xb0] sm:$0xff]  }
 0x33f   : > { %v1369_v3 = vpack.c.bf16 %v1365_v1, %v1361_v63 }
 0x341   : > { %v2345_v4 = vmul.bf16 3216621497, %v1369_v3 }
 0x343   : > { %2905 = vpow.bf16 %v2345_v4 }
 0x351   : > { %v2906_v10 = vpop.eup %2905 }
 0x352   : > { %v1374_v12 = vadd.bf16 1065369472, %v2906_v10  ;;  %v2893_v10 = vld [vmem:[#allocation9 + $0xa8] sm:$0xff]  }
 0x354   : > { %2907 = vrcp.bf16 %v1374_v12  ;;  %v2895_v12 = vld [vmem:[#allocation9 + $0x98] sm:$0xff]  }
 0x355   : > { %2909 = vtanh.bf16 %v1367_v11  ;;  %v2894_v11 = vld [vmem:[#allocation9 + $0xa0] sm:$0xff]  }
 0x362   : > { %v2908_v13 = vpop.eup %2907 }
 0x363   : > { %v1376_v15 = vmul.bf16 1065369472, %v2908_v13  ;;  %v2910_v17 = vpop.eup %2909  ;;  %v2896_v13 = vld [vmem:[#allocation9 + $0x90] sm:$0xff]  }
 0x365   : > { %v1377_v19 = vmul.bf16 %v2910_v17, %v1376_v15  ;;  %v2897_v15 = vld [vmem:[#allocation9 + $0x88] sm:$0xff]   ;;  %v2898_v17 = vld [vmem:[#allocation9 + $0x80] sm:$0xff]  }
 0x367   : > { %2542 = vmatmul.mubr.bf16.vlgmr.msra.gmra.mxu1 %v1377_v19  ;;  %v1601_v19 = vld [vmem:[#allocation8 + $0x4] sm:$0x3] }
 0x368   : > { %1913 = vmatpush1.bf16.msra.mxu1 %v2842_v18  ;;  %1944 = vmatprep.mubr.bf16.mxu1 %v3107_v0  ;;  %v2866_v0 = vld [vmem:[#allocation6 + $0x430] ss:$8 sps:$4 sm:$0xff]  }
 0x369   : > { %1914 = vmatprep.subr.bf16.mxu1 %v2850_v20 }
 0x36c   : > { %1915 = vmatpush1.bf16.msra.mxu1 %v2848_v21 }
 0x36d   : > { %1916 = vmatprep.subr.bf16.mxu1 %v2856_v22  ;;  %v1610_v22 = vrot.slane %v1601_v19, %v3349_v49 }
 0x370   : > { %1917 = vmatpush1.bf16.msra.mxu1 %v2854_v23 }
 0x371   : > { %1918 = vmatprep.subr.bf16.mxu1 %v2862_v26 }
 0x374   : > { %1919 = vmatpush1.bf16.msra.mxu1 %v2860_v28 }
 0x375   : > { %1920 = vmatprep.subr.bf16.mxu1 %v2868_v32 }
 0x378   : > { %1921 = vmatpush1.bf16.msra.mxu1 %v2866_v0 }
 0x379   : > { %1922 = vmatprep.subr.bf16.mxu1 %v2874_v35 }
 0x37c   : > { %1923 = vmatpush1.bf16.msra.mxu1 %v2872_v36 }
 0x37d   : > { %1924 = vmatprep.subr.bf16.mxu1 %v2880_v39 }
 0x380   : > { %1925 = vmatpush1.bf16.msra.mxu1 %v2878_v40 }
 0x381   : > { %1926 = vmatprep.subr.bf16.mxu1 %v2886_v44 }
 0x384   : > { %1927 = vmatpush1.bf16.msra.mxu1 %v2884_v46 }
 0x385   : > { %2545 = vmatprep.subr.bf16.mxu1 %v3108_v14 }
 0x427   : > { %v1485_v51 = vpop.f32.mrf.mxu1 }
 0x428   : > { %v1486_v52 = vadd.f32 %v2347_v50, %v1485_v51 }
 0x429   : > { %v2543_v56 = vpop.f32.mrf.mxu1 }
 0x42a   : > { %v3398_v58 = vadd.f32 %v1486_v52, %v899_v54  ;;  %v1496_v63 = vrot.slane %v1486_v52, 4 }
 0x42b   : > { %v1488_v59 = vpop.f32.mrf.mxu1 }
 0x42c   : > { %v1489_v60 = vadd.f32 %v2347_v50, %v1488_v59 }
 0x42d   : > { %v2544_v62 = vpop.f32.mrf.mxu1 }
 0x42e   : > { %v1497_v1 = vrot.slane %v1489_v60, 4  ;;  %v3404_v3 = vadd.f32 %v1489_v60, %v900_v61 }
 0x430   : > { %v1499_v42 = vsel %vm1498_vm10, %v1496_v63, %v1497_v1  ;;  %v1500_v53 = vsel %vm1498_vm10, %v1497_v1, %v1496_v63 }
 0x431   : > { %v1505_v27 = vsel %vm1494_vm9, %v1500_v53, 0.0  ;;  %v1516_v4 = vsel %vm1510_vm11, %v1500_v53, 0.0  ;;  %v2443_v5 = vpack.c.bf16 %v1499_v42, %v1499_v42 }
 0x432   : > { %v2464_v6 = vpack.c.bf16 %v1486_v52, %v1505_v27  ;;  %v2469_v7 = vpack.c.bf16 %v1516_v4, %v1489_v60 }
 0x433   : > { %1526 = vst [vmem:[#allocation2 + $0xc] sm:$0xf] %v2443_v5  ;;  %1545 = vst [vmem:[#allocation2 + $0x8] sm:$0xf] %v2443_v5 }
 0x434   : > { %2465 = vst [vmem:[#allocation2] sm:$0xff] %v2464_v6   ;;  %2477 = vst [vmem:[#allocation2 + $0x10] sm:$0xff] %v2469_v7  }
 0x43b   : > { %v1549_v30 = vld [vmem:[#allocation2 + $0xc] sm:$0xff]  ;;  %v2890_v45 = vld [vmem:[#allocation2 + $0x8] ss:$12 sps:$4 sm:$0xff]  }
 0x43c   : > { %v2362_v16 = vcombine.low %v2464_v6, %v1549_v30  ;;  %v2363_v55 = vcombine.high %v2464_v6, %v1549_v30  ;;  %1945 = vmatmul.mubr.bf16.vlgmr.msra.gmra.mxu1 %v2890_v45 }
 0x43d   : > { %2561 = vmatprep.mubr.msk.bf16.mxu1 %vm3109_vm4, %v3108_v14  ;;  %2546 = vmatpush3.bf16.msra.mxu1 %v2891_v8 }
 0x43e   : > { %1901 = vmatprep.mubr.bf16.mxu0 %v2363_v55  ;;  %2547 = vmatprep.subr.bf16.mxu1 %v3108_v14 }
 0x43f   : > { %1902 = vmatmul.mubr.bf16.vlgmr.msra.gmra.mxu0 %v2362_v16 }
 0x441   : > { %2548 = vmatpush3.bf16.msra.mxu1 %v2892_v9 }
 0x442   : > { %2549 = vmatprep.subr.bf16.mxu1 %v3108_v14 }
 0x445   : > { %2550 = vmatpush3.bf16.msra.mxu1 %v2893_v10 }
 0x446   : > { %2551 = vmatprep.subr.bf16.mxu1 %v3108_v14 }
 0x449   : > { %2552 = vmatpush3.bf16.msra.mxu1 %v2894_v11 }
 0x44a   : > { %2553 = vmatprep.subr.bf16.mxu1 %v3108_v14 }
 0x44d   : > { %2554 = vmatpush3.bf16.msra.mxu1 %v2895_v12 }
 0x44e   : > { %2555 = vmatprep.subr.bf16.mxu1 %v3108_v14 }
 0x451   : > { %2556 = vmatpush3.bf16.msra.mxu1 %v2896_v13 }
 0x452   : > { %2557 = vmatprep.subr.bf16.mxu1 %v3108_v14 }
 0x455   : > { %2558 = vmatpush3.bf16.msra.mxu1 %v2897_v15 }
 0x456   : > { %2559 = vmatprep.subr.bf16.mxu1 %v3108_v14  ;;  %v1606_v14 = vrot.slane %v1601_v19, %v3353_v2  ;;  %v2415_v2 = vld [vmem:[%s3477_s4 + $0x2] ss:$0 sm:$0xff] }
 0x459   : > { %2560 = vmatpush3.bf16.msra.mxu1 %v2898_v17 }
 0x4fc   : > { %v1946_v18 = vpop.f32.mrf.mxu1 }
 0x4fe   : > { %v1948_v21 = vpop.f32.mrf.mxu1 }
 0x4ff   : > { %v1903_v20 = vpop.f32.mrf.mxu0 }
 0x500   : > { %v1950_v24 = vpop.f32.mrf.mxu1  ;;  %v1904_v36 = vadd.f32 %v1903_v20, %v1606_v14 }
 0x501   : > { %v1905_v23 = vpop.f32.mrf.mxu0 }
 0x502   : > { %v1906_v26 = vadd.f32 %v1905_v23, %v1610_v22  ;;  %v1952_v31 = vpop.f32.mrf.mxu1  ;;  %v1947_v38 = vadd.f32 %v1946_v18, %v1904_v36 }
 0x503   : > { %v1907_v25 = vpop.f32.mrf.mxu0 }
 0x504   : > { %v1949_v32 = vadd.f32 %v1948_v21, %v1906_v26  ;;  %v1908_v35 = vadd.f32 %v1907_v25, %v1606_v14 }
 0x505   : > { %v1909_v28 = vpop.f32.mrf.mxu0 }
 0x506   : > { %v1910_v29 = vadd.f32 %v1909_v28, %v1610_v22  ;;  %v1951_v37 = vadd.f32 %v1950_v24, %v1908_v35 }
 0x508   : > { %v1953_v0 = vadd.f32 %v1952_v31, %v1910_v29  ;;  %v1955_v49 = vpack.c.bf16 %v1951_v37, %v1947_v38 }
 0x50a   : > { %v1957_v33 = vpack.c.bf16 %v1953_v0, %v1949_v32 }
 0x50c   : > { %v2413_v34 = vmul.bf16 3216621497, %v1957_v33 }
 0x50e   : > { %2911 = vpow.bf16 %v2413_v34 }
 0x51c   : > { %v2912_v39 = vpop.eup %2911 }
 0x51d   : > { %v1962_v40 = vadd.bf16 1065369472, %v2912_v39 }
 0x51f   : > { %2913 = vrcp.bf16 %v1962_v40 }
 0x520   : > { %2915 = vtanh.bf16 %v1955_v49 }
 0x52d   : > { %v2914_v41 = vpop.eup %2913 }
 0x52e   : > { %v1964_v43 = vmul.bf16 1065369472, %v2914_v41  ;;  %v2916_v44 = vpop.eup %2915 }
 0x530   : > { %v1965_v46 = vmul.bf16 %v2916_v44, %v1964_v43 }
 0x532   : > { %2562 = vmatmul.mubr.bf16.vlgmr.msra.gmra.mxu1 %v1965_v46 }
 0x5f2   : > { %v2073_v47 = vpop.f32.mrf.mxu1 }
 0x5f3   : > { %v2074_v50 = vadd.f32 %v2415_v2, %v2073_v47 }
 0x5f4   : > { %v2563_v48 = vpop.f32.mrf.mxu1 }
 0x5f5   : > { %v2080_v56 = vadd.f32 %v2074_v50, %v3398_v58 }
 0x5f6   : > { %v2076_v51 = vpop.f32.mrf.mxu1 }
 0x5f7   : > { %v2077_v52 = vadd.f32 %v2415_v2, %v2076_v51 }
 0x5f8   : > { %v2564_v54 = vpop.f32.mrf.mxu1 }
 0x5f9   : > { %v2081_v57 = vadd.f32 %v2077_v52, %v3404_v3 }
 0x5fb   : > { %v2474_v59 = vpack.c.bf16 %v2081_v57, %v2080_v56 }
 0x5fd   : > { %2475 = vst [vmem:[%s286_s16] sm:$0xff] %v2474_v59  }
 0x5fe   : > { %3036 = shalt.err (!%p3033_p9)
}
 0x5ff   : > { %s3037_s26 = scalar_lea.hbm %s3428_s9, 128  ;;  %s3041_s27 = scalar_lea.hbm %s3478_s5, 256 }
 0x600   : > { %p3038_p7 = scmp.ne.s32.totalorder %s3428_s9, %s3037_s26  ;;  %p3042_p2 = scmp.lt.s32.totalorder %s3428_s9, %s3478_s5 }
 0x601   : > { %p3043_p11 = scmp.lt.s32.totalorder %s3041_s27, %s3037_s26 }
 0x602   : > { %p3039_p4 = pnand %p3038_p7, %p3498_p0 }
 0x603   : > { %p3044_p13 = por %p3043_p11, %p3042_p2 }
 0x604   : > { %p3040_p8 = pneg %p3039_p4 }
 0x606   : > { %p3045_p12 = pnand %p3044_p13, %p3040_p8 }
 0x608   : > { %3048 = shalt.err (!%p3045_p12)
}
 0x609   : > { %s3111_s16 = smov 64   ;;  %s3112_s23 = smov 4  }
 0x60a   : > { %2579 = dma.vmem_to_hbm [thread:$0]  (%p3498_p0), %s3430_s12, 128, %s3428_s9, %s2093_s22, %s3111_s16, %s3111_s16, %s3112_s23  }
 0x60b PF: > { %s2121_s10 = sand.u32 1, %s3083_s18   ;;  %p3499_p5 = scmp.ne.s32.totalorder %s3485_s25, 0 }
 0x60c   : > { %p3500_p10 = scmp.ge.s32.totalorder %s3095_s21, 2  ;;  %s2122_s28 = scalar_lea.sflag [#allocation5], %s2121_s10 }
 0x60e   : > { %p2596_p1 = pnand %p3500_p10, %p3499_p5 }
 0x610   : > { %p2597_p3 = pneg %p2596_p1 }
 0x612   : > { %3078 = dma.done.wait (%p2597_p3), %s2122_s28, 128  }
 0x613   : > { %3080 = vsyncadd (%p2597_p3), %s2122_s28, 4294967168  ;;  %p20_p6 = scmp.ge.s32.totalorder %s3226_s8, 4   ;;  %s3501_s18 = smov %s3087_s19 }
 0x614   : > { %s3502_s19 = smov %s3091_s20  ;;  %s3503_s20 = smov %s3236_s11 }
 0x615   : > { %s3504_s21 = smov %s3226_s8  ;;  %22 = sbr.rel (!%p20_p6) target bundleno = 7 (0x7), region = 105 }
 0x61a   :  { %2127 = vsyncpa [#allocation4], 1 }
 0x61b   :  { %2129 = vsyncpa [#allocation4 + $0x1], 1 }
 0x61c   :  { %2130 = vsyncpa [#allocation7], 1 }
 0x61d   :  { %2131 = vsyncpa [#allocation10], 1 }
 0x61e   :  { %2132 = vsyncpa [#allocation5], 1 }
 0x61f   :  { %2134 = vsyncpa [#allocation5 + $0x1], 1 }

</bundles_post_ra>
